<compile_context>
chip_gen: v7x
topology: tpu7x:2x2x1
jax: 0.10.0
libtpu: 0.0.40
codegen_flags: <defaults>
</compile_context>

<pallas_src>
import numpy as np
import jax
import jax.numpy as jnp
from jax import lax
from jax.experimental import pallas as pl
from jax.experimental.pallas import tpu as pltpu


_VMEM_LIMIT = 64 * 1024 * 1024


# ----------------------------- circuit glue (plain JAX) -----------------------------
# Tiny 2x2 gates and kron chains: sub-vreg sized scalar work, left outside the kernel.

def rx(phi):
    c = jnp.cos(phi / 2).astype(jnp.complex64)
    s = jnp.sin(phi / 2).astype(jnp.complex64)
    return jnp.stack([c, -1j * s, -1j * s, c]).reshape(2, 2)


def ry(phi):
    c = jnp.cos(phi / 2).astype(jnp.complex64)
    s = jnp.sin(phi / 2).astype(jnp.complex64)
    return jnp.stack([c, -s, s, c]).reshape(2, 2)


def rz(phi):
    e_m = jnp.exp(-1j * phi.astype(jnp.complex64) / 2)
    e_p = jnp.exp(1j * phi.astype(jnp.complex64) / 2)
    z = jnp.zeros((), jnp.complex64)
    return jnp.stack([e_m, z, z, e_p]).reshape(2, 2)


def ryy(phi):
    r = ry(phi)
    return jnp.kron(r, r)


def multi_kron(x_list):
    x_k = jnp.ones((1, 1), jnp.complex64)
    for x in x_list:
        x_k = jnp.kron(x_k, x)
    return x_k


def gate_expand_1toN(U, N, target):
    eye2 = jnp.eye(2, dtype=jnp.complex64)
    return multi_kron([eye2] * target + [U] + [eye2] * (N - target - 1))


def gate_expand_2toN(U, N, targets):
    eye2 = jnp.eye(2, dtype=jnp.complex64)
    return multi_kron([eye2] * targets[0] + [U] + [eye2] * (N - targets[1] - 1))


def gate_sequence_product(U_list, n_qubits, left_to_right=True):
    U_overall = jnp.eye(2 ** n_qubits, dtype=jnp.complex64)
    for U in U_list:
        if left_to_right:
            U_overall = U @ U_overall
        else:
            U_overall = U_overall @ U
    return U_overall


def qconv0_unitary(weight, w_mul, n_qubits):
    w = weight * w_mul
    cir = []
    for which_q in range(0, n_qubits, 2):
        cir.append(gate_expand_1toN(rx(w[0]), n_qubits, which_q))
        cir.append(gate_expand_1toN(rx(w[1]), n_qubits, which_q + 1))
        cir.append(gate_expand_2toN(ryy(w[2]), n_qubits, [which_q, which_q + 1]))
        cir.append(gate_expand_1toN(rz(w[3]), n_qubits, which_q))
        cir.append(gate_expand_1toN(rz(w[4]), n_qubits, which_q + 1))
    return gate_sequence_product(cir, n_qubits)


def build_qconv0_operator(U):
    """Real (2*D^2, 2*D^2) operator W s.t. [yr | yi] = [xr | xi] @ W per row-vec'd X.

    Row-vec identity: vec_row(U^dag X U) = vec_row(X) @ N, with N = conj(U) kron U.
    Real embedding for right-multiplication: W = [[Nr, Ni], [-Ni, Nr]].
    Depends only on the 5 weights -> built once per weight update (cached).
    """
    N = jnp.kron(jnp.conj(U), U)
    nr = jnp.real(N).astype(jnp.float32)
    ni = jnp.imag(N).astype(jnp.float32)
    return jnp.block([[nr, ni], [-ni, nr]])


def _round_up(v, m):
    return ((v + m - 1) // m) * m


# ----------------------------- Pallas kernels (hot path) -----------------------------

def _kron_kernel(x_ref, wt_ref, o_ref):
    """[yr | yi] = [xr | xi] @ W.  Batch on sublanes (M), operator on lanes."""
    o_ref[...] = jnp.dot(x_ref[...], wt_ref[...],
                         preferred_element_type=jnp.float32)


def _qconv0_forward_kron(wt, x):
    """x: [B, D, D] complex64, wt: precomputed (2*D^2, 2*D^2) f32 operator."""
    B, D, _ = x.shape
    D2 = D * D

    xr = jnp.real(x).astype(jnp.float32).reshape(B, D2)
    xi = jnp.imag(x).astype(jnp.float32).reshape(B, D2)
    xcat = jnp.concatenate([xr, xi], axis=1)            # (B, 2*D2), batch on M axis

    # Batch tile along M: up to 512 rows/step, keep grid >= 2 (v7x megacore split).
    bt = min(512, _round_up(max(1, (B + 1) // 2), 8))
    nb = pl.cdiv(B, bt)
    b_pad = nb * bt
    if b_pad != B:
        xcat = jnp.pad(xcat, ((0, b_pad - B), (0, 0)))

    flops = int(2 * b_pad * (2 * D2) * (2 * D2))
    bytes_acc = int(4 * (2 * b_pad * 2 * D2 + (2 * D2) * (2 * D2)))

    out = pl.pallas_call(
        _kron_kernel,
        out_shape=jax.ShapeDtypeStruct((b_pad, 2 * D2), jnp.float32),
        grid=(nb,),
        in_specs=[
            pl.BlockSpec((bt, 2 * D2), lambda i: (i, 0)),        # batch block (M axis)
            pl.BlockSpec((2 * D2, 2 * D2), lambda i: (0, 0)),    # operator: resident
        ],
        out_specs=pl.BlockSpec((bt, 2 * D2), lambda i: (i, 0)),  # lane-dense output
        compiler_params=pltpu.CompilerParams(
            dimension_semantics=("parallel",),
            vmem_limit_bytes=_VMEM_LIMIT),
        cost_estimate=pl.CostEstimate(flops=flops, transcendentals=0,
                                      bytes_accessed=bytes_acc),
    )(xcat, wt)

    out = out[:B]
    yr = out[:, :D2].reshape(B, D, D)
    yi = out[:, D2:].reshape(B, D, D)
    return lax.complex(yr, yi).astype(jnp.complex64)


def _direct_kernel(udr_ref, udi_ref, ur_ref, ui_ref, xr_ref, xi_ref, or_ref, oi_ref):
    """out = U^dag @ X @ U for a block of Bt matrices; U^dag precomputed (no transposes)."""
    bt, d, _ = xr_ref.shape
    ur = ur_ref[...]
    ui = ui_ref[...]
    xr = xr_ref[...].reshape(bt * d, d)
    xi = xi_ref[...].reshape(bt * d, d)

    # Stage 1 (fills the MXU M dim): A = X @ U as flat (Bt*D, D) @ (D, D)
    ar = (jnp.dot(xr, ur, preferred_element_type=jnp.float32)
          - jnp.dot(xi, ui, preferred_element_type=jnp.float32)).reshape(bt, d, d)
    ai = (jnp.dot(xr, ui, preferred_element_type=jnp.float32)
          + jnp.dot(xi, ur, preferred_element_type=jnp.float32)).reshape(bt, d, d)

    udr = udr_ref[...]
    udi = udi_ref[...]
    # Stage 2: Y_b = U^dag @ A_b, unrolled over the small static batch tile.
    # TODO(synk): Karatsuba (3 matmuls per complex product) once validated vs 5e-4 tol.
    for b in range(bt):
        arb = ar[b]
        aib = ai[b]
        or_ref[b, :, :] = (jnp.dot(udr, arb, preferred_element_type=jnp.float32)
                           - jnp.dot(udi, aib, preferred_element_type=jnp.float32))
        oi_ref[b, :, :] = (jnp.dot(udr, aib, preferred_element_type=jnp.float32)
                           + jnp.dot(udi, arb, preferred_element_type=jnp.float32))


def _qconv0_forward_direct(U, x):
    """x: [B, D, D] complex64.  Batch-blocked sandwich for larger D."""
    B, D, _ = x.shape
    udag = jnp.conj(U).T
    udr = jnp.real(udag).astype(jnp.float32)
    udi = jnp.imag(udag).astype(jnp.float32)
    ur = jnp.real(U).astype(jnp.float32)
    ui = jnp.imag(U).astype(jnp.float32)
    xr = jnp.real(x).astype(jnp.float32)
    xi = jnp.imag(x).astype(jnp.float32)

    # ~512 MXU rows per step for the flat stage; small static unroll for stage 2.
    bt = max(1, min(16, 512 // D))
    nb = pl.cdiv(B, bt)
    b_pad = nb * bt
    if b_pad != B:
        pad = ((0, b_pad - B), (0, 0), (0, 0))
        xr = jnp.pad(xr, pad)
        xi = jnp.pad(xi, pad)

    # TODO(synk): add a K-tiled reduction grid axis (+ VMEM scratch accumulators and
    #             Buffered(1) U specs) so D >= 1024 fits v7x's 64 MiB VMEM.
    u_spec = pl.BlockSpec((D, D), lambda b: (0, 0))
    x_spec = pl.BlockSpec((bt, D, D), lambda b: (b, 0, 0))

    flops = int(16 * b_pad * D * D * D)
    bytes_acc = int(4 * (4 * b_pad * D * D + 4 * D * D))

    out_r, out_i = pl.pallas_call(
        _direct_kernel,
        out_shape=(jax.ShapeDtypeStruct((b_pad, D, D), jnp.float32),
                   jax.ShapeDtypeStruct((b_pad, D, D), jnp.float32)),
        grid=(nb,),
        in_specs=[u_spec, u_spec, u_spec, u_spec, x_spec, x_spec],
        out_specs=(x_spec, x_spec),
        compiler_params=pltpu.CompilerParams(
            dimension_semantics=("parallel",),
            vmem_limit_bytes=_VMEM_LIMIT),
        cost_estimate=pl.CostEstimate(flops=flops, transcendentals=0,
                                      bytes_accessed=bytes_acc),
    )(udr, udi, ur, ui, xr, xi)

    out = lax.complex(out_r, out_i).astype(jnp.complex64)
    return out[:B]


def qconv0_forward(U, x, wt=None):
    """Apply dag(U) @ x @ U.  x: [D, D] or [B, D, D] complex64."""
    squeeze = (x.ndim == 2)
    if squeeze:
        x = x[None]
    D = U.shape[0]
    if D <= 16:
        # Kron trick only where its D/2 FLOP inflation is negligible and the
        # (2*D^2)^2 operator stays tiny (<= 1 MiB at D=16).
        if wt is None:
            wt = build_qconv0_operator(U)
        out = _qconv0_forward_kron(wt, x)
    else:
        out = _qconv0_forward_direct(U, x)
    return out[0] if squeeze else out


# ----------------------------- module-equivalent wrapper -----------------------------

class QEqualizedConv0:
    def __init__(self, n_qubits, gain=2 ** 0.5, use_wscale=True, lrmul=1, key=None):
        he_std = gain * 5 ** (-0.5)
        if use_wscale:
            init_std = 1.0 / lrmul
            self.w_mul = he_std * lrmul
        else:
            init_std = he_std / lrmul
            self.w_mul = lrmul
        if key is None:
            key = jax.random.PRNGKey(0)
        # deterministic init: uniform(0, 2*pi) * init_std
        self.weight = (jax.random.uniform(key, (5,), jnp.float32,
                                          minval=0.0, maxval=2 * np.pi) * init_std)
        self.n_qubits = n_qubits
        self._cache_key = None
        self._cache = None

    def qconv0(self):
        return qconv0_unitary(self.weight, self.w_mul, self.n_qubits)

    def _operators(self):
        # U and the packed kron operator depend only on the 5 weights: rebuild
        # only when self.weight is rebound (i.e. after a weight update).
        if self._cache_key is not self.weight:
            U = qconv0_unitary(self.weight, self.w_mul, self.n_qubits)
            D = 2 ** self.n_qubits
            wt = build_qconv0_operator(U) if D <= 16 else None
            self._cache = (U, wt)
            self._cache_key = self.weight
        return self._cache

    def forward(self, x):
        U, wt = self._operators()
        return qconv0_forward(U, x, wt=wt)


if __name__ == "__main__":
    key = jax.random.PRNGKey(0)
    k_w, k_xr, k_xi, k_x2r, k_x2i = jax.random.split(key, 5)

    # ---------------- kron path: n_qubits=4 -> D=16, batch on the M axis ----------------
    n_qubits = 4                  # must be even (gates applied on qubit pairs)
    D = 2 ** n_qubits             # 16
    B = 256                       # -> bt=128, grid=(2,): both v7x TCs get work

    module = QEqualizedConv0(n_qubits, key=k_w)
    x = (jax.random.normal(k_xr, (B, D, D), jnp.float32)
         + 1j * jax.random.normal(k_xi, (B, D, D), jnp.float32)).astype(jnp.complex64)

    out = jax.block_until_ready(module.forward(x))

    U = module.qconv0()
    ref = jnp.conj(U).T @ x @ U
    np.testing.assert_allclose(np.asarray(out), np.asarray(ref), rtol=5e-4, atol=5e-4)

    # ---------------- direct (batch-blocked) path: n_qubits=6 -> D=64 ----------------
    n_qubits2 = 6
    Dd = 2 ** n_qubits2           # 64
    B2 = 24                       # -> bt=8, grid=(3,)

    module2 = QEqualizedConv0(n_qubits2, key=k_w)
    x2 = (jax.random.normal(k_x2r, (B2, Dd, Dd), jnp.float32)
          + 1j * jax.random.normal(k_x2i, (B2, Dd, Dd), jnp.float32)).astype(jnp.complex64)

    out2 = jax.block_until_ready(module2.forward(x2))

    U2 = module2.qconv0()
    ref2 = jnp.conj(U2).T @ x2 @ U2
    np.testing.assert_allclose(np.asarray(out2), np.asarray(ref2), rtol=5e-4, atol=5e-4)

    print("KERNEL_OK")
</pallas_src>

<mosaic_0001>
module attributes {stable_mosaic.version = 11 : i64} {
  func.func @_kron_kernel(%arg0: i32, %arg1: memref<128x512xf32, #tpu.memory_space<vmem>>, %arg2: memref<512x512xf32, #tpu.memory_space<vmem>>, %arg3: memref<128x512xf32, #tpu.memory_space<vmem>>) attributes {dimension_semantics = [#tpu.dimension_semantics<parallel>], iteration_bounds = array<i64: 2>, scalar_prefetch = 0 : i64, scratch_operands = 0 : i64, tpu.core_type = #tpu.core_type<tc>, window_params = [{transform_indices = @transform_0, window_bounds = array<i64: 128, 512>}, {pipeline_mode = #tpu.pipeline_mode<synchronous>, transform_indices = @transform_1, window_bounds = array<i64: 512, 512>}, {transform_indices = @transform_2, window_bounds = array<i64: 128, 512>}]} {
    %c0 = arith.constant 0 : index
    %c0_0 = arith.constant 0 : index
    %0 = vector.load %arg1[%c0, %c0_0] : memref<128x512xf32, #tpu.memory_space<vmem>>, vector<128x512xf32>
    %c0_1 = arith.constant 0 : index
    %c0_2 = arith.constant 0 : index
    %1 = vector.load %arg2[%c0_1, %c0_2] : memref<512x512xf32, #tpu.memory_space<vmem>>, vector<512x512xf32>
    %cst = arith.constant dense<0.000000e+00> : vector<128x512xf32>
    %2 = tpu.matmul %0, %1, %cst {dimension_numbers = #tpu.dot_dimension_numbers<[1], [0], [0], [1], [0, 0, 1, 1], [], []>} : vector<128x512xf32>, vector<512x512xf32>, vector<128x512xf32> -> vector<128x512xf32>
    %c0_3 = arith.constant 0 : index
    %c0_4 = arith.constant 0 : index
    %3 = vector.load %arg3[%c0_3, %c0_4] : memref<128x512xf32, #tpu.memory_space<vmem>>, vector<128x512xf32>
    tpu.vector_store %arg3[%c0_3, %c0_4], %2 {strides = array<i32>} : memref<128x512xf32, #tpu.memory_space<vmem>>, vector<128x512xf32>,
    return
  }
  func.func @transform_0(%arg0: i32) -> (i32, i32) {
    %c0_i32 = arith.constant 0 : i32
    %c0_i32_0 = arith.constant 0 : i32
    return %arg0, %c0_i32 : i32, i32
  }
  func.func @transform_1(%arg0: i32) -> (i32, i32) {
    %c0_i32 = arith.constant 0 : i32
    %c0_i32_0 = arith.constant 0 : i32
    %c0_i32_1 = arith.constant 0 : i32
    return %c0_i32, %c0_i32_0 : i32, i32
  }
  func.func @transform_2(%arg0: i32) -> (i32, i32) {
    %c0_i32 = arith.constant 0 : i32
    %c0_i32_0 = arith.constant 0 : i32
    return %arg0, %c0_i32 : i32, i32
  }
}

</mosaic_0001>

<bundles_post_ra>
// kernel: tpu_custom_call.1
= control target key start
LH: loop header
LB: loop body
LE: loop exit
PB: predicated region body
PF: predicated region fallthrough
CT: control target
= control target key end

     0   :  { %7 = vsyncpa [#allocation3], 0  ;;  %s2205_s0 = inlined_call_operand.hbm [shape: f32[256,512], index: 0, kind: input, shape index: {}]   ;;  %s2206_s1 = inlined_call_operand.hbm [shape: f32[512,512], index: 1, kind: input, shape index: {}]   ;;  %s2207_s2 = inlined_call_operand.hbm [shape: f32[256,512], index: 2, kind: output, shape index: {}]  }
   0x1   :  { %9 = vsyncpa [#allocation3 + $0x1], 0 }
   0x2   :  { %10 = vsyncpa [#allocation6], 0 }
   0x3   :  { %11 = vsyncpa [#allocation4], 0 }
   0x4   :  { %13 = vsyncpa [#allocation4 + $0x1], 0  ;;  %s1861_s9 = smov 0   ;;  %s1863_s10 = smov 0  }
   0x5   :  { %s1865_s11 = smov 0   ;;  %s1867_s12 = smov 0  }
   0x6 LB: > { %s1882_s13 = sadd.s32 4294967295, %s1837_s12   ;;  %s1306_s14 = sadd.s32 4294967294, %s1837_s12   ;;  %s1837_s12 = sphi %s1867_s12, %s2227_s12   ;;  %s1833_s11 = sphi %s1865_s11, %s2226_s11   ;;  %s1829_s10 = sphi %s1863_s10, %s2225_s10   ;;  %s1825_s9 = sphi %s1861_s9, %s2224_s9  }
   0x7   : > { %p39_p0 = scmp.ne.s32.totalorder %s1829_s10, %s1825_s9  ;;  %p2208_p1 = scmp.eq.s32.totalorder %s1882_s13, 0 }
   0x8   : > { %p90_p3 = scmp.eq.s32.totalorder %s1306_s14, 1  ;;  %p1307_p5 = scmp.ge.s32.totalorder %s1837_s12, 1 }
   0x9   : > { %p1891_p4 = por %p2208_p1, %p39_p0  ;;  %p97_p7 = scmp.lt.s32.totalorder %s1837_s12, 3 }
   0xa   : > { %p1896_p6 = por %p90_p3, %p39_p0  ;;  %s1839_s18 = smov [#allocation5]  }
   0xb   : > { %s2211_s15 = scalar_select %p1891_p4, 1, 0 }
   0xc   : > { %s2212_s16 = scalar_select %p1896_p6, 1, 0 }
   0xd   : > { %p1901_p8 = pnand %p1307_p5, %p97_p7  ;;  %s109_s19 = sshll.u32 %s1839_s18, 4  ;;  %s1905_s19 = int_to_ptr.vmem [resolvable:$true] %s109_s19 }
   0xe   : > { %s1917_s21 = sadd.s32 1, %s1837_s12   ;;  %s26_s22 = sadd.s32 1, %s1833_s11 }
   0xf   : > { %s2213_s17 = scalar_select %p1901_p8, 1, 0 }
  0x10   : > { %p1656_p9 = pneg %p1901_p8  ;;  %s23_s23 = ssub.s32 %s1837_s12, %s1917_s21 }
  0x11   : > { %s1709_s26 = scalar_lea.hbm %s2206_s1, 32768 }
  0x12   : > { %p1912_p11 = pnand %p1656_p9, %p2208_p1  ;;  %p1710_p12 = scmp.ne.s32.totalorder %s2206_s1, %s1709_s26 }
  0x13   : > { %p1716_p5 = scmp.lt.u32.totalorder %s1709_s26, %s2206_s1 }
  0x14   : > { %p1711_p13 = pneg %p1912_p11 }
  0x16   : > { %p1712_p0 = pnand %p1711_p13, %p1710_p12 }
  0x18   : > { %p1713_p3 = pneg %p1712_p0 }
  0x1a   : > { %p1718_p7 = pnand %p1716_p5, %p1713_p3 }
  0x1c   : > { %1721 = shalt.err (!%p1718_p7)
}
  0x1d   : > { %s1722_s3 = scalar_lea.vmem %s1905_s19, 32768  ;;  %p1730_p2 = scmp.lt.s32.totalorder %s1905_s19, %s1905_s19 }
  0x1e   : > { %p1723_p9 = scmp.ne.s32.totalorder %s1905_s19, %s1722_s3  ;;  %p1731_p6 = scmp.lt.s32.totalorder %s1722_s3, %s1722_s3 }
  0x20   : > { %p1725_p10 = pnand %p1723_p9, %p1711_p13  ;;  %p1732_p4 = por %p1731_p6, %p1730_p2 }
  0x22   : > { %p1726_p1 = pneg %p1725_p10 }
  0x24   : > { %p1733_p8 = pnand %p1732_p4, %p1726_p1 }
  0x26   : > { %1736 = shalt.err (!%p1733_p8)
}
  0x27   : > { %s1840_s4 = smov 512   ;;  %s1841_s5 = smov 32  }
  0x28   : > { %1659 = dma.hbm_to_vmem [thread:$0]  (!%p1912_p11), %s2206_s1, 32768, %s1905_s19, [#allocation6], %s1840_s4, %s1840_s4, %s1841_s5  }
  0x29   : > { %p24_p1 = scmp.eq.s32.totalorder %s23_s23, 0  ;;  %p33_p2 = scmp.ne.s32.totalorder %s1833_s11, %s1829_s10 }
  0x2a   : > { %p34_p4 = scmp.eq.s32.totalorder %s1837_s12, 0  ;;  %p1669_p6 = scmp.lt.s32.totalorder %s1837_s12, 2 }
  0x2b   : > { %s1951_s8 = scalar_select %p24_p1, %s1833_s11, %s26_s22  }
  0x2c   : > { %p35_p8 = por %p34_p4, %p33_p2  ;;  %p2215_p10 = scmp.eq.s32.totalorder %s1882_s13, 1 }
  0x2d   : > { %s123_s18 = sand.u32 1, %s1833_s11   ;;  %s1325_s20 = sshll.u32 %s1837_s12, 13 }
  0x2e   : > { %p1955_p12 = por %p2215_p10, %p33_p2  ;;  %s1310_s24 = sshll.u32 %s123_s18, 9 }
  0x2f   : > { %s1964_s27 = scalar_lea.hbm %s2205_s0, %s1325_s20  ;;  %s127_s19 = scalar_lea.vmem [#allocation2], %s1310_s24 }
  0x30   : > { %s135_s22 = sshll.u32 %s127_s19, 4  ;;  %p1966_p11 = pnand %p1669_p6, %p35_p8  ;;  %s1970_s22 = int_to_ptr.vmem [resolvable:$true] %s135_s22 }
  0x31   : > { %s1972_s28 = scalar_lea.sflag [#allocation3], %s123_s18  ;;  %s1737_s29 = scalar_lea.hbm %s1964_s27, 8192 }
  0x32   : > { %p1738_p13 = scmp.ne.s32.totalorder %s1964_s27, %s1737_s29  ;;  %p1739_p0 = pneg %p1966_p11 }
  0x33   : > { %s1742_s6 = scalar_lea.hbm %s2205_s0, 16384  ;;  %p1743_p7 = scmp.lt.u32.totalorder %s1964_s27, %s2205_s0 }
  0x34   : > { %p1740_p3 = pnand %p1739_p0, %p1738_p13  ;;  %p1744_p9 = scmp.lt.u32.totalorder %s1742_s6, %s1737_s29 }
  0x35   : > { %p1746_p2 = scmp.lt.u32.totalorder %s1737_s29, %s1964_s27 }
  0x36   : > { %p1741_p5 = pneg %p1740_p3  ;;  %p1745_p1 = por %p1744_p9, %p1743_p7 }
  0x38   : > { %p1747_p4 = por %p1746_p2, %p1745_p1 }
  0x3a   : > { %p1748_p6 = pnand %p1747_p4, %p1741_p5 }
  0x3c   : > { %1751 = shalt.err (!%p1748_p6)
}
  0x3d   : > { %s1752_s18 = scalar_lea.vmem %s1970_s22, 8192  ;;  %s1842_s24 = smov [#allocation2]  }
  0x3e   : > { %p1753_p8 = scmp.ne.s32.totalorder %s1970_s22, %s1752_s18  ;;  %s1757_s25 = sshll.u32 %s1842_s24, 4  ;;  %s1758_s25 = int_to_ptr.vmem [resolvable:$false] %s1757_s25 }
  0x3f   : > { %s1759_s26 = scalar_lea.vmem %s1758_s25, 16384  ;;  %p1760_p3 = scmp.lt.s32.totalorder %s1970_s22, %s1758_s25 }
  0x40   : > { %p1755_p10 = pnand %p1753_p8, %p1739_p0  ;;  %p1761_p7 = scmp.lt.s32.totalorder %s1759_s26, %s1752_s18 }
  0x42   : > { %p1756_p13 = pneg %p1755_p10  ;;  %p1762_p9 = por %p1761_p7, %p1760_p3 }
  0x44   : > { %p1763_p1 = pnand %p1762_p9, %p1756_p13 }
  0x46   : > { %1766 = shalt.err (!%p1763_p1)
}
  0x47   : > { %1663 = dma.hbm_to_vmem [thread:$0]  (!%p1966_p11), %s1964_s27, 8192, %s1970_s22, %s1972_s28, %s1840_s4, %s1840_s4, %s1841_s5  }
  0x48   : > { %p2218_p0 = scmp.ne.s32.totalorder %s2213_s17, 0 }
  0x49   : > { %s2006_s19 = sand.u32 (!%p2218_p0), 1, %s1829_s10   ;;  %p2219_p5 = scmp.ne.s32.totalorder (!%p2218_p0), %s2211_s15, 0 }
  0x4a   : > { %147 = sbr.rel (%p2218_p0) target bundleno = 506 (0x1fa), region = 28  ;;  %s1315_s29 = sshll.u32 (!%p2218_p0), %s2006_s19, 9 }
  0x4b   : > { %s150_s30 = scalar_lea.sflag (!%p2218_p0), [#allocation3], %s2006_s19  ;;  %s2012_s23 = scalar_lea.vmem (!%p2218_p0), [#allocation2], %s1315_s29 }
  0x51   : > { %1812 = dma.done.wait (%p2219_p5), %s150_s30, 8192  }
  0x52   : > { %1814 = vsyncadd (%p2219_p5), %s150_s30, 4294959104  ;;  %p2220_p11 = scmp.eq.s32.totalorder %s1882_s13, 0 }
  0x54   : > { %1816 = dma.done.wait (%p2220_p11), [#allocation6], 32768   ;;  %p2221_p2 = pmov %p2220_p11 }
  0x55   : > { %v245_v0 = vld [vmem:[#allocation5 + $0x8] sm:$0xff]  ;;  %v247_v2 = vld [vmem:[#allocation5 + $0x18] sm:$0xff]  ;;  %v244_v5 = vld [vmem:[#allocation5] sm:$0xff]  ;;  %s2088_s15 = scalar_lea.vmem [#allocation7], %s1315_s29  ;;  %s1327_s17 = sshll.u32 %s1882_s13, 13 }
  0x56   : > { %1818 = vsyncadd (%p2221_p2), [#allocation6], 4294934528  ;;  %v249_v1 = vld [vmem:[#allocation5 + $0x28] sm:$0xff]  ;;  %v251_v4 = vld [vmem:[#allocation5 + $0x38] sm:$0xff]  ;;  %s1223_s4 = sshll.u32 %s2088_s15, 4  ;;  %s2155_s22 = scalar_lea.hbm %s2207_s2, %s1327_s17  ;;  %s2157_s4 = int_to_ptr.vmem [resolvable:$true] %s1223_s4 }
  0x57   : > { %v1328_v3 = vpack.c.bf16 %v249_v1, %v245_v0  ;;  %v248_v6 = vld [vmem:[#allocation5 + $0x20] sm:$0xff]  ;;  %v1456_v7 = vpack.c.bf16 %v251_v4, %v247_v2  ;;  %v246_v9 = vld [vmem:[#allocation5 + $0x10] sm:$0xff]  ;;  %v253_v11 = vld [vmem:[#allocation5 + $0x48] sm:$0xff]  ;;  %s1209_s13 = scalar_lea.sflag [#allocation4], %s2006_s19  ;;  %s1767_s28 = scalar_lea.vmem %s2157_s4, 8192 }
  0x58   : > { %v1330_v8 = vpack.c.bf16 %v248_v6, %v244_v5  ;;  %v250_v10 = vld [vmem:[#allocation5 + $0x30] sm:$0xff]  ;;  %v257_v13 = vld [vmem:[#allocation5 + $0x68] sm:$0xff]  ;;  %v255_v14 = vld [vmem:[#allocation5 + $0x58] sm:$0xff]  ;;  %p1768_p4 = scmp.ne.s32.totalorder %s2157_s4, %s1767_s28  ;;  %s1843_s3 = smov [#allocation7]  }
  0x59   : > { %1329 = vmatprep.subr.bf16.mxu0 %v1328_v3  ;;  %v1458_v12 = vpack.c.bf16 %v250_v10, %v246_v9  ;;  %v259_v15 = vld [vmem:[#allocation5 + $0x78] sm:$0xff]  ;;  %1457 = vmatprep.subr.bf16.mxu1 %v1456_v7  ;;  %v1332_v16 = vpack.c.bf16 %v257_v13, %v253_v11  ;;  %v252_v18 = vld [vmem:[#allocation5 + $0x40] sm:$0xff]  ;;  %v254_v20 = vld [vmem:[#allocation5 + $0x50] sm:$0xff]  ;;  %s1771_s6 = sshll.u32 %s1843_s3, 4  ;;  %s1772_s6 = int_to_ptr.vmem [resolvable:$false] %s1771_s6 }
  0x5a   : > { %1331 = vmatpush1.bf16.msra.mxu0 %v1330_v8  ;;  %v1460_v17 = vpack.c.bf16 %v259_v15, %v255_v14  ;;  %v256_v19 = vld [vmem:[#allocation5 + $0x60] sm:$0xff]  ;;  %v258_v22 = vld [vmem:[#allocation5 + $0x70] sm:$0xff]  ;;  %v261_v23 = vld [vmem:[#allocation5 + $0x88] sm:$0xff]  ;;  %p1769_p6 = pnand %p1768_p4, %p1955_p12  ;;  %s1773_s7 = scalar_lea.vmem %s1772_s6, 16384 }
  0x5b   : > { %1459 = vmatpush1.bf16.msra.mxu1 %v1458_v12  ;;  %v1334_v21 = vpack.c.bf16 %v256_v19, %v252_v18  ;;  %v265_v24 = vld [vmem:[#allocation5 + $0xa8] sm:$0xff]  ;;  %1333 = vmatprep.subr.bf16.mxu0 %v1332_v16  ;;  %v1462_v25 = vpack.c.bf16 %v258_v22, %v254_v20  ;;  %v263_v27 = vld [vmem:[#allocation5 + $0x98] sm:$0xff]  ;;  %v260_v29 = vld [vmem:[#allocation5 + $0x80] sm:$0xff]  ;;  %p1774_p10 = scmp.lt.s32.totalorder %s2157_s4, %s1772_s6  ;;  %p1775_p13 = scmp.lt.s32.totalorder %s1773_s7, %s1767_s28 }
  0x5c   : > { %1461 = vmatprep.subr.bf16.mxu1 %v1460_v17  ;;  %v1336_v26 = vpack.c.bf16 %v265_v24, %v261_v23  ;;  %v267_v28 = vld [vmem:[#allocation5 + $0xb8] sm:$0xff]  ;;  %v264_v31 = vld [vmem:[#allocation5 + $0xa0] sm:$0xff]  ;;  %v262_v32 = vld [vmem:[#allocation5 + $0x90] sm:$0xff]  ;;  %p1770_p8 = pneg %p1769_p6 }
  0x5d   : > { %v1464_v30 = vpack.c.bf16 %v267_v28, %v263_v27  ;;  %v266_v33 = vld [vmem:[#allocation5 + $0xb0] sm:$0xff]  ;;  %v1338_v34 = vpack.c.bf16 %v264_v31, %v260_v29  ;;  %v269_v35 = vld [vmem:[#allocation5 + $0xc8] sm:$0xff]  ;;  %v271_v37 = vld [vmem:[#allocation5 + $0xd8] sm:$0xff]  ;;  %p1776_p3 = por %p1775_p13, %p1774_p10 }
  0x5e   : > { %1335 = vmatpush1.bf16.msra.mxu0 %v1334_v21  ;;  %v273_v36 = vld [vmem:[#allocation5 + $0xe8] sm:$0xff]  ;;  %v1466_v38 = vpack.c.bf16 %v266_v33, %v262_v32  ;;  %v275_v40 = vld [vmem:[#allocation5 + $0xf8] sm:$0xff]  ;;  %v268_v41 = vld [vmem:[#allocation5 + $0xc0] sm:$0xff] }
  0x5f   : > { %1463 = vmatpush1.bf16.msra.mxu1 %v1462_v25  ;;  %1337 = vmatprep.subr.bf16.mxu0 %v1336_v26  ;;  %v1340_v39 = vpack.c.bf16 %v273_v36, %v269_v35  ;;  %v272_v42 = vld [vmem:[#allocation5 + $0xe0] sm:$0xff]  ;;  %v1468_v43 = vpack.c.bf16 %v275_v40, %v271_v37  ;;  %v270_v44 = vld [vmem:[#allocation5 + $0xd0] sm:$0xff]  ;;  %v277_v46 = vld [vmem:[#allocation5 + $0x108] sm:$0xff]  ;;  %p1777_p7 = pnand %p1776_p3, %p1770_p8 }
  0x60   : > { %1465 = vmatprep.subr.bf16.mxu1 %v1464_v30  ;;  %v274_v45 = vld [vmem:[#allocation5 + $0xf0] sm:$0xff]  ;;  %v281_v47 = vld [vmem:[#allocation5 + $0x128] sm:$0xff]  ;;  %v279_v48 = vld [vmem:[#allocation5 + $0x118] sm:$0xff]  ;;  %v1342_v50 = vpack.c.bf16 %v272_v42, %v268_v41 }
  0x61   : > { %v283_v49 = vld [vmem:[#allocation5 + $0x138] sm:$0xff]  ;;  %v1470_v51 = vpack.c.bf16 %v274_v45, %v270_v44  ;;  %v1344_v52 = vpack.c.bf16 %v281_v47, %v277_v46  ;;  %v276_v53 = vld [vmem:[#allocation5 + $0x100] sm:$0xff]  ;;  %v278_v55 = vld [vmem:[#allocation5 + $0x110] sm:$0xff] }
  0x62   : > { %1339 = vmatpush1.bf16.msra.mxu0 %v1338_v34  ;;  %v280_v54 = vld [vmem:[#allocation5 + $0x120] sm:$0xff]  ;;  %v1472_v56 = vpack.c.bf16 %v283_v49, %v279_v48  ;;  %v282_v57 = vld [vmem:[#allocation5 + $0x130] sm:$0xff]  ;;  %v285_v58 = vld [vmem:[#allocation5 + $0x148] sm:$0xff] }
  0x63   : > { %1467 = vmatpush1.bf16.msra.mxu1 %v1466_v38  ;;  %1341 = vmatprep.subr.bf16.mxu0 %v1340_v39  ;;  %v289_v59 = vld [vmem:[#allocation5 + $0x168] sm:$0xff]  ;;  %v287_v60 = vld [vmem:[#allocation5 + $0x158] sm:$0xff]  ;;  %v1346_v62 = vpack.c.bf16 %v280_v54, %v276_v53  ;;  %v1474_v63 = vpack.c.bf16 %v282_v57, %v278_v55  ;;  %v284_v1 = vld [vmem:[#allocation5 + $0x140] sm:$0xff] }
  0x64   : > { %1469 = vmatprep.subr.bf16.mxu1 %v1468_v43  ;;  %v291_v61 = vld [vmem:[#allocation5 + $0x178] sm:$0xff]  ;;  %v1348_v0 = vpack.c.bf16 %v289_v59, %v285_v58  ;;  %v288_v2 = vld [vmem:[#allocation5 + $0x160] sm:$0xff]  ;;  %v286_v3 = vld [vmem:[#allocation5 + $0x150] sm:$0xff] }
  0x65   : > { %v1476_v4 = vpack.c.bf16 %v291_v61, %v287_v60  ;;  %v290_v5 = vld [vmem:[#allocation5 + $0x170] sm:$0xff]  ;;  %v293_v6 = vld [vmem:[#allocation5 + $0x188] sm:$0xff]  ;;  %v295_v8 = vld [vmem:[#allocation5 + $0x198] sm:$0xff]  ;;  %v1350_v10 = vpack.c.bf16 %v288_v2, %v284_v1 }
  0x66   : > { %1343 = vmatpush1.bf16.msra.mxu0 %v1342_v50  ;;  %v297_v7 = vld [vmem:[#allocation5 + $0x1a8] sm:$0xff]  ;;  %v299_v9 = vld [vmem:[#allocation5 + $0x1b8] sm:$0xff]  ;;  %v1478_v11 = vpack.c.bf16 %v290_v5, %v286_v3  ;;  %v292_v13 = vld [vmem:[#allocation5 + $0x180] sm:$0xff] }
  0x67   : > { %1471 = vmatpush1.bf16.msra.mxu1 %v1470_v51  ;;  %1345 = vmatprep.subr.bf16.mxu0 %v1344_v52  ;;  %v1352_v12 = vpack.c.bf16 %v297_v7, %v293_v6  ;;  %v296_v14 = vld [vmem:[#allocation5 + $0x1a0] sm:$0xff]  ;;  %v294_v15 = vld [vmem:[#allocation5 + $0x190] sm:$0xff]  ;;  %v1480_v16 = vpack.c.bf16 %v299_v9, %v295_v8  ;;  %v301_v18 = vld [vmem:[#allocation5 + $0x1c8] sm:$0xff] }
  0x68   : > { %1473 = vmatprep.subr.bf16.mxu1 %v1472_v56  ;;  %v298_v17 = vld [vmem:[#allocation5 + $0x1b0] sm:$0xff]  ;;  %v305_v19 = vld [vmem:[#allocation5 + $0x1e8] sm:$0xff]  ;;  %v303_v20 = vld [vmem:[#allocation5 + $0x1d8] sm:$0xff]  ;;  %v1354_v22 = vpack.c.bf16 %v296_v14, %v292_v13 }
  0x69   : > { %v307_v21 = vld [vmem:[#allocation5 + $0x1f8] sm:$0xff]  ;;  %v1482_v23 = vpack.c.bf16 %v298_v17, %v294_v15  ;;  %v1356_v24 = vpack.c.bf16 %v305_v19, %v301_v18  ;;  %v300_v25 = vld [vmem:[#allocation5 + $0x1c0] sm:$0xff]  ;;  %v302_v27 = vld [vmem:[#allocation5 + $0x1d0] sm:$0xff] }
  0x6a   : > { %1347 = vmatpush1.bf16.msra.mxu0 %v1346_v62  ;;  %v304_v26 = vld [vmem:[#allocation5 + $0x1e0] sm:$0xff]  ;;  %v1484_v28 = vpack.c.bf16 %v307_v21, %v303_v20  ;;  %v306_v29 = vld [vmem:[#allocation5 + $0x1f0] sm:$0xff]  ;;  %v309_v30 = vld [vmem:[#allocation5 + $0x208] sm:$0xff] }
  0x6b   : > { %1475 = vmatpush1.bf16.msra.mxu1 %v1474_v63  ;;  %1349 = vmatprep.subr.bf16.mxu0 %v1348_v0  ;;  %v313_v31 = vld [vmem:[#allocation5 + $0x228] sm:$0xff]  ;;  %v311_v32 = vld [vmem:[#allocation5 + $0x218] sm:$0xff]  ;;  %v1358_v34 = vpack.c.bf16 %v304_v26, %v300_v25  ;;  %v1486_v35 = vpack.c.bf16 %v306_v29, %v302_v27  ;;  %v308_v37 = vld [vmem:[#allocation5 + $0x200] sm:$0xff] }
  0x6c   : > { %1477 = vmatprep.subr.bf16.mxu1 %v1476_v4  ;;  %v315_v33 = vld [vmem:[#allocation5 + $0x238] sm:$0xff]  ;;  %v1360_v36 = vpack.c.bf16 %v313_v31, %v309_v30  ;;  %v312_v38 = vld [vmem:[#allocation5 + $0x220] sm:$0xff]  ;;  %v310_v39 = vld [vmem:[#allocation5 + $0x210] sm:$0xff] }
  0x6d   : > { %v1488_v40 = vpack.c.bf16 %v315_v33, %v311_v32  ;;  %v314_v41 = vld [vmem:[#allocation5 + $0x230] sm:$0xff]  ;;  %v317_v42 = vld [vmem:[#allocation5 + $0x248] sm:$0xff]  ;;  %v319_v44 = vld [vmem:[#allocation5 + $0x258] sm:$0xff]  ;;  %v1362_v46 = vpack.c.bf16 %v312_v38, %v308_v37 }
  0x6e   : > { %1351 = vmatpush1.bf16.msra.mxu0 %v1350_v10  ;;  %v321_v43 = vld [vmem:[#allocation5 + $0x268] sm:$0xff]  ;;  %v323_v45 = vld [vmem:[#allocation5 + $0x278] sm:$0xff]  ;;  %v1490_v47 = vpack.c.bf16 %v314_v41, %v310_v39  ;;  %v316_v49 = vld [vmem:[#allocation5 + $0x240] sm:$0xff] }
  0x6f   : > { %1479 = vmatpush1.bf16.msra.mxu1 %v1478_v11  ;;  %1353 = vmatprep.subr.bf16.mxu0 %v1352_v12  ;;  %v1364_v48 = vpack.c.bf16 %v321_v43, %v317_v42  ;;  %v320_v50 = vld [vmem:[#allocation5 + $0x260] sm:$0xff]  ;;  %v318_v51 = vld [vmem:[#allocation5 + $0x250] sm:$0xff]  ;;  %v1492_v52 = vpack.c.bf16 %v323_v45, %v319_v44  ;;  %v325_v54 = vld [vmem:[#allocation5 + $0x288] sm:$0xff] }
  0x70   : > { %1481 = vmatprep.subr.bf16.mxu1 %v1480_v16  ;;  %v322_v53 = vld [vmem:[#allocation5 + $0x270] sm:$0xff]  ;;  %v329_v55 = vld [vmem:[#allocation5 + $0x2a8] sm:$0xff]  ;;  %v327_v56 = vld [vmem:[#allocation5 + $0x298] sm:$0xff]  ;;  %v1366_v58 = vpack.c.bf16 %v320_v50, %v316_v49 }
  0x71   : > { %v331_v57 = vld [vmem:[#allocation5 + $0x2b8] sm:$0xff]  ;;  %v1494_v59 = vpack.c.bf16 %v322_v53, %v318_v51  ;;  %v1368_v60 = vpack.c.bf16 %v329_v55, %v325_v54  ;;  %v324_v61 = vld [vmem:[#allocation5 + $0x280] sm:$0xff]  ;;  %v326_v63 = vld [vmem:[#allocation5 + $0x290] sm:$0xff] }
  0x72   : > { %1355 = vmatpush1.bf16.msra.mxu0 %v1354_v22  ;;  %v328_v62 = vld [vmem:[#allocation5 + $0x2a0] sm:$0xff]  ;;  %v1496_v0 = vpack.c.bf16 %v331_v57, %v327_v56  ;;  %v330_v1 = vld [vmem:[#allocation5 + $0x2b0] sm:$0xff]  ;;  %v333_v2 = vld [vmem:[#allocation5 + $0x2c8] sm:$0xff] }
  0x73   : > { %1483 = vmatpush1.bf16.msra.mxu1 %v1482_v23  ;;  %1357 = vmatprep.subr.bf16.mxu0 %v1356_v24  ;;  %v337_v3 = vld [vmem:[#allocation5 + $0x2e8] sm:$0xff]  ;;  %v335_v4 = vld [vmem:[#allocation5 + $0x2d8] sm:$0xff]  ;;  %v1370_v6 = vpack.c.bf16 %v328_v62, %v324_v61  ;;  %v332_v7 = vld [vmem:[#allocation5 + $0x2c0] sm:$0xff]  ;;  %v1498_v8 = vpack.c.bf16 %v330_v1, %v326_v63 }
  0x74   : > { %1485 = vmatprep.subr.bf16.mxu1 %v1484_v28  ;;  %v339_v5 = vld [vmem:[#allocation5 + $0x2f8] sm:$0xff]  ;;  %v1372_v9 = vpack.c.bf16 %v337_v3, %v333_v2  ;;  %v336_v10 = vld [vmem:[#allocation5 + $0x2e0] sm:$0xff]  ;;  %v334_v11 = vld [vmem:[#allocation5 + $0x2d0] sm:$0xff] }
  0x75   : > { %v338_v12 = vld [vmem:[#allocation5 + $0x2f0] sm:$0xff]  ;;  %v1500_v13 = vpack.c.bf16 %v339_v5, %v335_v4  ;;  %v341_v14 = vld [vmem:[#allocation5 + $0x308] sm:$0xff]  ;;  %v343_v17 = vld [vmem:[#allocation5 + $0x318] sm:$0xff]  ;;  %v1374_v19 = vpack.c.bf16 %v336_v10, %v332_v7 }
  0x76   : > { %1359 = vmatpush1.bf16.msra.mxu0 %v1358_v34  ;;  %v345_v15 = vld [vmem:[#allocation5 + $0x328] sm:$0xff]  ;;  %v347_v18 = vld [vmem:[#allocation5 + $0x338] sm:$0xff]  ;;  %v1502_v20 = vpack.c.bf16 %v338_v12, %v334_v11  ;;  %v340_v22 = vld [vmem:[#allocation5 + $0x300] sm:$0xff] }
  0x77   : > { %1487 = vmatpush1.bf16.msra.mxu1 %v1486_v35  ;;  %1361 = vmatprep.subr.bf16.mxu0 %v1360_v36  ;;  %v181_v16 = vld [vmem:[%s2012_s23 + $0x8] sm:$0xff]  ;;  %v1376_v21 = vpack.c.bf16 %v345_v15, %v341_v14  ;;  %v344_v23 = vld [vmem:[#allocation5 + $0x320] sm:$0xff]  ;;  %v342_v24 = vld [vmem:[#allocation5 + $0x310] sm:$0xff]  ;;  %v1504_v25 = vpack.c.bf16 %v347_v18, %v343_v17 }
  0x78   : > { %1489 = vmatprep.subr.bf16.mxu1 %v1488_v40  ;;  %564 = vmatprep.mubr.f32.mxu0 %v181_v16  ;;  %v346_v26 = vld [vmem:[#allocation5 + $0x330] sm:$0xff]  ;;  %v349_v27 = vld [vmem:[#allocation5 + $0x348] sm:$0xff]  ;;  %v351_v29 = vld [vmem:[#allocation5 + $0x358] sm:$0xff]  ;;  %v1378_v31 = vpack.c.bf16 %v344_v23, %v340_v22 }
  0x79   : > { %886 = vmatprep.mubr.f32.mxu1 %v181_v16  ;;  %v353_v28 = vld [vmem:[#allocation5 + $0x368] sm:$0xff]  ;;  %v355_v30 = vld [vmem:[#allocation5 + $0x378] sm:$0xff]  ;;  %v1506_v32 = vpack.c.bf16 %v346_v26, %v342_v24  ;;  %v348_v34 = vld [vmem:[#allocation5 + $0x340] sm:$0xff] }
  0x7a   : > { %1363 = vmatpush1.bf16.msra.mxu0 %v1362_v46  ;;  %v1380_v33 = vpack.c.bf16 %v353_v28, %v349_v27  ;;  %v352_v35 = vld [vmem:[#allocation5 + $0x360] sm:$0xff]  ;;  %v350_v36 = vld [vmem:[#allocation5 + $0x350] sm:$0xff]  ;;  %v1508_v37 = vpack.c.bf16 %v355_v30, %v351_v29  ;;  %v357_v39 = vld [vmem:[#allocation5 + $0x388] sm:$0xff] }
  0x7b   : > { %1491 = vmatpush1.bf16.msra.mxu1 %v1490_v47  ;;  %1365 = vmatprep.subr.bf16.mxu0 %v1364_v48  ;;  %v354_v38 = vld [vmem:[#allocation5 + $0x370] sm:$0xff]  ;;  %v361_v40 = vld [vmem:[#allocation5 + $0x3a8] sm:$0xff]  ;;  %v359_v41 = vld [vmem:[#allocation5 + $0x398] sm:$0xff]  ;;  %v1382_v43 = vpack.c.bf16 %v352_v35, %v348_v34 }
  0x7c   : > { %1493 = vmatprep.subr.bf16.mxu1 %v1492_v52  ;;  %v363_v42 = vld [vmem:[#allocation5 + $0x3b8] sm:$0xff]  ;;  %v1510_v44 = vpack.c.bf16 %v354_v38, %v350_v36  ;;  %v1384_v45 = vpack.c.bf16 %v361_v40, %v357_v39  ;;  %v356_v46 = vld [vmem:[#allocation5 + $0x380] sm:$0xff]  ;;  %v358_v48 = vld [vmem:[#allocation5 + $0x390] sm:$0xff] }
  0x7d   : > { %v360_v47 = vld [vmem:[#allocation5 + $0x3a0] sm:$0xff]  ;;  %v1512_v49 = vpack.c.bf16 %v363_v42, %v359_v41  ;;  %v362_v50 = vld [vmem:[#allocation5 + $0x3b0] sm:$0xff]  ;;  %v365_v51 = vld [vmem:[#allocation5 + $0x3c8] sm:$0xff] }
  0x7e   : > { %1367 = vmatpush1.bf16.msra.mxu0 %v1366_v58  ;;  %v369_v52 = vld [vmem:[#allocation5 + $0x3e8] sm:$0xff]  ;;  %v367_v53 = vld [vmem:[#allocation5 + $0x3d8] sm:$0xff]  ;;  %v1386_v55 = vpack.c.bf16 %v360_v47, %v356_v46  ;;  %v1514_v56 = vpack.c.bf16 %v362_v50, %v358_v48  ;;  %v364_v58 = vld [vmem:[#allocation5 + $0x3c0] sm:$0xff] }
  0x7f   : > { %1495 = vmatpush1.bf16.msra.mxu1 %v1494_v59  ;;  %1369 = vmatprep.subr.bf16.mxu0 %v1368_v60  ;;  %v371_v54 = vld [vmem:[#allocation5 + $0x3f8] sm:$0xff]  ;;  %v1388_v57 = vpack.c.bf16 %v369_v52, %v365_v51  ;;  %v368_v59 = vld [vmem:[#allocation5 + $0x3e0] sm:$0xff]  ;;  %v366_v60 = vld [vmem:[#allocation5 + $0x3d0] sm:$0xff] }
  0x80   : > { %1497 = vmatprep.subr.bf16.mxu1 %v1496_v0  ;;  %v1516_v61 = vpack.c.bf16 %v371_v54, %v367_v53  ;;  %v370_v62 = vld [vmem:[#allocation5 + $0x3f0] sm:$0xff]  ;;  %v373_v63 = vld [vmem:[#allocation5 + $0x408] sm:$0xff]  ;;  %v375_v1 = vld [vmem:[#allocation5 + $0x418] sm:$0xff]  ;;  %v1390_v3 = vpack.c.bf16 %v368_v59, %v364_v58 }
  0x81   : > { %v377_v0 = vld [vmem:[#allocation5 + $0x428] sm:$0xff]  ;;  %v379_v2 = vld [vmem:[#allocation5 + $0x438] sm:$0xff]  ;;  %v1518_v4 = vpack.c.bf16 %v370_v62, %v366_v60  ;;  %v376_v7 = vld [vmem:[#allocation5 + $0x420] sm:$0xff] }
  0x82   : > { %1371 = vmatpush1.bf16.msra.mxu0 %v1370_v6  ;;  %v1392_v5 = vpack.c.bf16 %v377_v0, %v373_v63  ;;  %v372_v6 = vld [vmem:[#allocation5 + $0x400] sm:$0xff]  ;;  %v378_v10 = vld [vmem:[#allocation5 + $0x430] sm:$0xff]  ;;  %v381_v11 = vld [vmem:[#allocation5 + $0x448] sm:$0xff] }
  0x83   : > { %1499 = vmatpush1.bf16.msra.mxu1 %v1498_v8  ;;  %1373 = vmatprep.subr.bf16.mxu0 %v1372_v9  ;;  %v1520_v8 = vpack.c.bf16 %v379_v2, %v375_v1  ;;  %v374_v9 = vld [vmem:[#allocation5 + $0x410] sm:$0xff]  ;;  %v385_v12 = vld [vmem:[#allocation5 + $0x468] sm:$0xff]  ;;  %v1394_v14 = vpack.c.bf16 %v376_v7, %v372_v6  ;;  %v383_v15 = vld [vmem:[#allocation5 + $0x458] sm:$0xff] }
  0x84   : > { %1501 = vmatprep.subr.bf16.mxu1 %v1500_v13  ;;  %v180_v13 = vld [vmem:[%s2012_s23] sm:$0xff]  ;;  %v387_v16 = vld [vmem:[#allocation5 + $0x478] sm:$0xff]  ;;  %v1522_v17 = vpack.c.bf16 %v378_v10, %v374_v9  ;;  %v382_v22 = vld [vmem:[#allocation5 + $0x450] sm:$0xff] }
  0x85   : > { %v380_v18 = vld [vmem:[#allocation5 + $0x440] sm:$0xff]  ;;  %v386_v23 = vld [vmem:[#allocation5 + $0x470] sm:$0xff]  ;;  %v1524_v24 = vpack.c.bf16 %v387_v16, %v383_v15  ;;  %v393_v26 = vld [vmem:[#allocation5 + $0x4a8] sm:$0xff] }
  0x86   : > { %1375 = vmatpush1.bf16.msra.mxu0 %v1374_v19  ;;  %v384_v19 = vld [vmem:[#allocation5 + $0x460] sm:$0xff]  ;;  %v391_v29 = vld [vmem:[#allocation5 + $0x498] sm:$0xff]  ;;  %v189_v34 = vld [vmem:[%s2012_s23 + $0x48] sm:$0xff] }
  0x87   : > { %1503 = vmatpush1.bf16.msra.mxu1 %v1502_v20  ;;  %1377 = vmatprep.subr.bf16.mxu0 %v1376_v21  ;;  %v185_v20 = vld [vmem:[%s2012_s23 + $0x28] sm:$0xff]  ;;  %v1396_v21 = vpack.c.bf16 %v385_v12, %v381_v11  ;;  %v184_v27 = vld [vmem:[%s2012_s23 + $0x20] sm:$0xff]  ;;  %v1398_v28 = vpack.c.bf16 %v384_v19, %v380_v18  ;;  %v395_v30 = vld [vmem:[#allocation5 + $0x4b8] sm:$0xff] }
  0x88   : > { %1505 = vmatprep.subr.bf16.mxu1 %v1504_v25  ;;  %v389_v25 = vld [vmem:[#allocation5 + $0x488] sm:$0xff]  ;;  %v390_v36 = vld [vmem:[#allocation5 + $0x490] sm:$0xff]  ;;  %v1528_v38 = vpack.c.bf16 %v395_v30, %v391_v29  ;;  %v188_v41 = vld [vmem:[%s2012_s23 + $0x40] sm:$0xff] }
  0x89   : > { %v1400_v35 = vpack.c.bf16 %v393_v26, %v389_v25  ;;  %v397_v39 = vld [vmem:[#allocation5 + $0x4c8] sm:$0xff]  ;;  %v396_v46 = vld [vmem:[#allocation5 + $0x4c0] sm:$0xff]  ;;  %v398_v50 = vld [vmem:[#allocation5 + $0x4d0] sm:$0xff] }
  0x8a   : > { %1379 = vmatpush1.bf16.msra.mxu0 %v1378_v31  ;;  %v1526_v31 = vpack.c.bf16 %v386_v23, %v382_v22  ;;  %v401_v40 = vld [vmem:[#allocation5 + $0x4e8] sm:$0xff]  ;;  %v400_v47 = vld [vmem:[#allocation5 + $0x4e0] sm:$0xff]  ;;  %v402_v51 = vld [vmem:[#allocation5 + $0x4f0] sm:$0xff] }
  0x8b   : > { %1507 = vmatpush1.bf16.msra.mxu1 %v1506_v32  ;;  %1381 = vmatprep.subr.bf16.mxu0 %v1380_v33  ;;  %v388_v32 = vld [vmem:[#allocation5 + $0x480] sm:$0xff]  ;;  %v193_v48 = vld [vmem:[%s2012_s23 + $0x68] sm:$0xff]  ;;  %v411_v58 = vld [vmem:[#allocation5 + $0x538] sm:$0xff]  ;;  %v1534_v59 = vpack.c.bf16 %v402_v51, %v398_v50 }
  0x8c   : > { %1509 = vmatprep.subr.bf16.mxu1 %v1508_v37  ;;  %v392_v33 = vld [vmem:[#allocation5 + $0x4a0] sm:$0xff]  ;;  %v394_v37 = vld [vmem:[#allocation5 + $0x4b0] sm:$0xff]  ;;  %v405_v53 = vld [vmem:[#allocation5 + $0x508] sm:$0xff] }
  0x8d   : > { %v1402_v42 = vpack.c.bf16 %v392_v33, %v388_v32  ;;  %v409_v54 = vld [vmem:[#allocation5 + $0x528] sm:$0xff]  ;;  %v404_v60 = vld [vmem:[#allocation5 + $0x500] sm:$0xff]  ;;  %v406_v0 = vld [vmem:[#allocation5 + $0x510] sm:$0xff] }
  0x8e   : > { %1383 = vmatpush1.bf16.msra.mxu0 %v1382_v43  ;;  %v399_v43 = vld [vmem:[#allocation5 + $0x4d8] sm:$0xff]  ;;  %v197_v62 = vld [vmem:[%s2012_s23 + $0x88] sm:$0xff]  ;;  %v1408_v63 = vpack.c.bf16 %v409_v54, %v405_v53  ;;  %v410_v1 = vld [vmem:[#allocation5 + $0x530] sm:$0xff] }
  0x8f   : > { %1511 = vmatpush1.bf16.msra.mxu1 %v1510_v44  ;;  %1385 = vmatprep.subr.bf16.mxu0 %v1384_v45  ;;  %v403_v44 = vld [vmem:[#allocation5 + $0x4f8] sm:$0xff]  ;;  %v1530_v45 = vpack.c.bf16 %v394_v37, %v390_v36  ;;  %v1538_v9 = vpack.c.bf16 %v410_v1, %v406_v0  ;;  %v412_v10 = vld [vmem:[#allocation5 + $0x540] sm:$0xff]  ;;  %v201_v12 = vld [vmem:[%s2012_s23 + $0xa8] sm:$0xff] }
  0x90   : > { %1513 = vmatprep.subr.bf16.mxu1 %v1512_v49  ;;  %v1404_v49 = vpack.c.bf16 %v401_v40, %v397_v39  ;;  %v1532_v52 = vpack.c.bf16 %v403_v44, %v399_v43  ;;  %v415_v7 = vld [vmem:[#allocation5 + $0x558] sm:$0xff]  ;;  %v416_v11 = vld [vmem:[#allocation5 + $0x560] sm:$0xff]  ;;  %v418_v15 = vld [vmem:[#allocation5 + $0x570] sm:$0xff] }
  0x91   : > { %v425_v18 = vld [vmem:[#allocation5 + $0x5a8] sm:$0xff]  ;;  %v200_v19 = vld [vmem:[%s2012_s23 + $0xa0] sm:$0xff]  ;;  %v427_v22 = vld [vmem:[#allocation5 + $0x5b8] sm:$0xff] }
  0x92   : > { %1387 = vmatpush1.bf16.msra.mxu0 %v1386_v55  ;;  %v192_v55 = vld [vmem:[%s2012_s23 + $0x60] sm:$0xff]  ;;  %v205_v26 = vld [vmem:[%s2012_s23 + $0xc8] sm:$0xff]  ;;  %v426_v29 = vld [vmem:[#allocation5 + $0x5b0] sm:$0xff] }
  0x93   : > { %1515 = vmatpush1.bf16.msra.mxu1 %v1514_v56  ;;  %1389 = vmatprep.subr.bf16.mxu0 %v1388_v57  ;;  %v1406_v56 = vpack.c.bf16 %v400_v47, %v396_v46  ;;  %v407_v57 = vld [vmem:[#allocation5 + $0x518] sm:$0xff]  ;;  %v424_v25 = vld [vmem:[#allocation5 + $0x5a0] sm:$0xff]  ;;  %v433_v32 = vld [vmem:[#allocation5 + $0x5e8] sm:$0xff] }
  0x94   : > { %1517 = vmatprep.subr.bf16.mxu1 %v1516_v61  ;;  %v408_v61 = vld [vmem:[#allocation5 + $0x520] sm:$0xff]  ;;  %v1536_v2 = vpack.c.bf16 %v411_v58, %v407_v57  ;;  %v435_v36 = vld [vmem:[#allocation5 + $0x5f8] sm:$0xff]  ;;  %v209_v40 = vld [vmem:[%s2012_s23 + $0xe8] sm:$0xff] }
  0x95   : > { %v1410_v6 = vpack.c.bf16 %v408_v61, %v404_v60  ;;  %v204_v33 = vld [vmem:[%s2012_s23 + $0xc0] sm:$0xff]  ;;  %v434_v43 = vld [vmem:[#allocation5 + $0x5f0] sm:$0xff]  ;;  %v441_v46 = vld [vmem:[#allocation5 + $0x628] sm:$0xff] }
  0x96   : > { %1391 = vmatpush1.bf16.msra.mxu0 %v1390_v3  ;;  %v413_v3 = vld [vmem:[#allocation5 + $0x548] sm:$0xff]  ;;  %v432_v39 = vld [vmem:[#allocation5 + $0x5e0] sm:$0xff]  ;;  %v443_v50 = vld [vmem:[#allocation5 + $0x638] sm:$0xff] }
  0x97   : > { %1519 = vmatpush1.bf16.msra.mxu1 %v1518_v4  ;;  %1393 = vmatprep.subr.bf16.mxu0 %v1392_v5  ;;  %v417_v4 = vld [vmem:[#allocation5 + $0x568] sm:$0xff]  ;;  %v196_v5 = vld [vmem:[%s2012_s23 + $0x80] sm:$0xff]  ;;  %v442_v57 = vld [vmem:[#allocation5 + $0x630] sm:$0xff] }
  0x98   : > { %1521 = vmatprep.subr.bf16.mxu1 %v1520_v8  ;;  %v419_v8 = vld [vmem:[#allocation5 + $0x578] sm:$0xff]  ;;  %v208_v47 = vld [vmem:[%s2012_s23 + $0xe0] sm:$0xff]  ;;  %v213_v54 = vld [vmem:[%s2012_s23 + $0x108] sm:$0xff] }
  0x99   : > { %565 = vmatmul.mubr.f32.vlgmr.msra.gmra.mrb[0].mxu0 %v180_v13  ;;  %v1540_v16 = vpack.c.bf16 %v419_v8, %v415_v7  ;;  %v440_v53 = vld [vmem:[#allocation5 + $0x620] sm:$0xff]  ;;  %v449_v60 = vld [vmem:[#allocation5 + $0x668] sm:$0xff]  ;;  %v451_v0 = vld [vmem:[#allocation5 + $0x678] sm:$0xff] }
  0x9a   : > { %887 = vmatmul.mubr.f32.vlgmr.msra.gmra.mrb[0].mxu1 %v180_v13  ;;  %1395 = vmatpush1.bf16.msra.mxu0 %v1394_v14  ;;  %v1412_v13 = vpack.c.bf16 %v417_v4, %v413_v3  ;;  %v414_v14 = vld [vmem:[#allocation5 + $0x550] sm:$0xff]  ;;  %v212_v61 = vld [vmem:[%s2012_s23 + $0x100] sm:$0xff]  ;;  %v217_v4 = vld [vmem:[%s2012_s23 + $0x128] sm:$0xff] }
  0x9b   : > { %1523 = vmatpush1.bf16.msra.mxu1 %v1522_v17  ;;  %570 = vmatprep.mubr.f32.mxu0 %v185_v20  ;;  %v421_v17 = vld [vmem:[#allocation5 + $0x588] sm:$0xff]  ;;  %v1542_v23 = vpack.c.bf16 %v418_v15, %v414_v14  ;;  %v448_v3 = vld [vmem:[#allocation5 + $0x660] sm:$0xff]  ;;  %v450_v7 = vld [vmem:[#allocation5 + $0x670] sm:$0xff] }
  0x9c   : > { %892 = vmatprep.mubr.f32.mxu1 %v185_v20  ;;  %1397 = vmatprep.subr.bf16.mxu0 %v1396_v21  ;;  %v1414_v20 = vpack.c.bf16 %v416_v11, %v412_v10  ;;  %v423_v21 = vld [vmem:[#allocation5 + $0x598] sm:$0xff]  ;;  %v457_v10 = vld [vmem:[#allocation5 + $0x6a8] sm:$0xff]  ;;  %v216_v11 = vld [vmem:[%s2012_s23 + $0x120] sm:$0xff] }
  0x9d   : > { %571 = vmatmul.mubr.f32.gmra.mrb[2].mxu0 %v184_v27  ;;  %1525 = vmatprep.subr.bf16.mxu1 %v1524_v24  ;;  %v420_v24 = vld [vmem:[#allocation5 + $0x580] sm:$0xff]  ;;  %v1544_v30 = vpack.c.bf16 %v427_v22, %v423_v21  ;;  %v459_v14 = vld [vmem:[#allocation5 + $0x6b8] sm:$0xff]  ;;  %v458_v21 = vld [vmem:[#allocation5 + $0x6b0] sm:$0xff] }
  0x9e   : > { %893 = vmatmul.mubr.f32.gmra.mrb[2].mxu1 %v184_v27  ;;  %1399 = vmatpush1.bf16.msra.mxu0 %v1398_v28  ;;  %v1416_v27 = vpack.c.bf16 %v425_v18, %v421_v17  ;;  %v422_v28 = vld [vmem:[#allocation5 + $0x590] sm:$0xff]  ;;  %v456_v17 = vld [vmem:[#allocation5 + $0x6a0] sm:$0xff]  ;;  %v221_v18 = vld [vmem:[%s2012_s23 + $0x148] sm:$0xff] }
  0x9f   : > { %1527 = vmatpush1.bf16.msra.mxu1 %v1526_v31  ;;  %576 = vmatprep.mubr.f32.mxu0 %v189_v34  ;;  %v429_v31 = vld [vmem:[#allocation5 + $0x5c8] sm:$0xff]  ;;  %v1546_v37 = vpack.c.bf16 %v426_v29, %v422_v28  ;;  %v467_v28 = vld [vmem:[#allocation5 + $0x6f8] sm:$0xff] }
  0xa0   : > { %898 = vmatprep.mubr.f32.mxu1 %v189_v34  ;;  %1401 = vmatprep.subr.bf16.mxu0 %v1400_v35  ;;  %v1418_v34 = vpack.c.bf16 %v424_v25, %v420_v24  ;;  %v431_v35 = vld [vmem:[#allocation5 + $0x5d8] sm:$0xff]  ;;  %v465_v24 = vld [vmem:[#allocation5 + $0x6e8] sm:$0xff]  ;;  %v220_v25 = vld [vmem:[%s2012_s23 + $0x140] sm:$0xff] }
  0xa1   : > { %577 = vmatmul.mubr.f32.gmra.mrb[4].mxu0 %v188_v41  ;;  %1529 = vmatprep.subr.bf16.mxu1 %v1528_v38  ;;  %v428_v38 = vld [vmem:[#allocation5 + $0x5c0] sm:$0xff]  ;;  %v1548_v44 = vpack.c.bf16 %v435_v36, %v431_v35  ;;  %v466_v35 = vld [vmem:[#allocation5 + $0x6f0] sm:$0xff] }
  0xa2   : > { %899 = vmatmul.mubr.f32.gmra.mrb[4].mxu1 %v188_v41  ;;  %1403 = vmatpush1.bf16.msra.mxu0 %v1402_v42  ;;  %v1420_v41 = vpack.c.bf16 %v433_v32, %v429_v31  ;;  %v430_v42 = vld [vmem:[#allocation5 + $0x5d0] sm:$0xff]  ;;  %v464_v31 = vld [vmem:[#allocation5 + $0x6e0] sm:$0xff]  ;;  %v225_v32 = vld [vmem:[%s2012_s23 + $0x168] sm:$0xff] }
  0xa3   : > { %1531 = vmatpush1.bf16.msra.mxu1 %v1530_v45  ;;  %582 = vmatprep.mubr.f32.mxu0 %v193_v48  ;;  %v437_v45 = vld [vmem:[#allocation5 + $0x608] sm:$0xff]  ;;  %v1550_v51 = vpack.c.bf16 %v434_v43, %v430_v42  ;;  %v475_v42 = vld [vmem:[#allocation5 + $0x738] sm:$0xff] }
  0xa4   : > { %904 = vmatprep.mubr.f32.mxu1 %v193_v48  ;;  %1405 = vmatprep.subr.bf16.mxu0 %v1404_v49  ;;  %v1422_v48 = vpack.c.bf16 %v432_v39, %v428_v38  ;;  %v439_v49 = vld [vmem:[#allocation5 + $0x618] sm:$0xff]  ;;  %v473_v38 = vld [vmem:[#allocation5 + $0x728] sm:$0xff]  ;;  %v224_v39 = vld [vmem:[%s2012_s23 + $0x160] sm:$0xff] }
  0xa5   : > { %583 = vmatmul.mubr.f32.gmra.mrb[6].mxu0 %v192_v55  ;;  %1533 = vmatprep.subr.bf16.mxu1 %v1532_v52  ;;  %v436_v52 = vld [vmem:[#allocation5 + $0x600] sm:$0xff]  ;;  %v1552_v58 = vpack.c.bf16 %v443_v50, %v439_v49  ;;  %v474_v49 = vld [vmem:[#allocation5 + $0x730] sm:$0xff] }
  0xa6   : > { %905 = vmatmul.mubr.f32.gmra.mrb[6].mxu1 %v192_v55  ;;  %1407 = vmatpush1.bf16.msra.mxu0 %v1406_v56  ;;  %v1424_v55 = vpack.c.bf16 %v441_v46, %v437_v45  ;;  %v438_v56 = vld [vmem:[#allocation5 + $0x610] sm:$0xff]  ;;  %v472_v45 = vld [vmem:[#allocation5 + $0x720] sm:$0xff]  ;;  %v229_v46 = vld [vmem:[%s2012_s23 + $0x188] sm:$0xff] }
  0xa7   : > { %1535 = vmatpush1.bf16.msra.mxu1 %v1534_v59  ;;  %588 = vmatprep.mubr.f32.mxu0 %v197_v62  ;;  %v445_v59 = vld [vmem:[#allocation5 + $0x648] sm:$0xff]  ;;  %v1554_v1 = vpack.c.bf16 %v442_v57, %v438_v56  ;;  %v483_v56 = vld [vmem:[#allocation5 + $0x778] sm:$0xff] }
  0xa8   : > { %910 = vmatprep.mubr.f32.mxu1 %v197_v62  ;;  %1409 = vmatprep.subr.bf16.mxu0 %v1408_v63  ;;  %v1426_v62 = vpack.c.bf16 %v440_v53, %v436_v52  ;;  %v447_v63 = vld [vmem:[#allocation5 + $0x658] sm:$0xff]  ;;  %v481_v52 = vld [vmem:[#allocation5 + $0x768] sm:$0xff]  ;;  %v228_v53 = vld [vmem:[%s2012_s23 + $0x180] sm:$0xff] }
  0xa9   : > { %589 = vmatmul.mubr.f32.gmra.mrb[8].mxu0 %v196_v5  ;;  %1537 = vmatprep.subr.bf16.mxu1 %v1536_v2  ;;  %v444_v2 = vld [vmem:[#allocation5 + $0x640] sm:$0xff]  ;;  %v1556_v8 = vpack.c.bf16 %v451_v0, %v447_v63  ;;  %v482_v63 = vld [vmem:[#allocation5 + $0x770] sm:$0xff] }
  0xaa   : > { %911 = vmatmul.mubr.f32.gmra.mrb[8].mxu1 %v196_v5  ;;  %1411 = vmatpush1.bf16.msra.mxu0 %v1410_v6  ;;  %v1428_v5 = vpack.c.bf16 %v449_v60, %v445_v59  ;;  %v446_v6 = vld [vmem:[#allocation5 + $0x650] sm:$0xff]  ;;  %v480_v59 = vld [vmem:[#allocation5 + $0x760] sm:$0xff]  ;;  %v233_v60 = vld [vmem:[%s2012_s23 + $0x1a8] sm:$0xff] }
  0xab   : > { %1539 = vmatpush1.bf16.msra.mxu1 %v1538_v9  ;;  %594 = vmatprep.mubr.f32.mxu0 %v201_v12  ;;  %v453_v9 = vld [vmem:[#allocation5 + $0x688] sm:$0xff]  ;;  %v1558_v15 = vpack.c.bf16 %v450_v7, %v446_v6  ;;  %v491_v6 = vld [vmem:[#allocation5 + $0x7b8] sm:$0xff] }
  0xac   : > { %916 = vmatprep.mubr.f32.mxu1 %v201_v12  ;;  %1413 = vmatprep.subr.bf16.mxu0 %v1412_v13  ;;  %v1430_v12 = vpack.c.bf16 %v448_v3, %v444_v2  ;;  %v455_v13 = vld [vmem:[#allocation5 + $0x698] sm:$0xff]  ;;  %v489_v2 = vld [vmem:[#allocation5 + $0x7a8] sm:$0xff]  ;;  %v232_v3 = vld [vmem:[%s2012_s23 + $0x1a0] sm:$0xff] }
  0xad   : > { %595 = vmatmul.mubr.f32.gmra.mrb[10].mxu0 %v200_v19  ;;  %1541 = vmatprep.subr.bf16.mxu1 %v1540_v16  ;;  %v452_v16 = vld [vmem:[#allocation5 + $0x680] sm:$0xff]  ;;  %v1560_v22 = vpack.c.bf16 %v459_v14, %v455_v13  ;;  %v490_v13 = vld [vmem:[#allocation5 + $0x7b0] sm:$0xff] }
  0xae   : > { %917 = vmatmul.mubr.f32.gmra.mrb[10].mxu1 %v200_v19  ;;  %1415 = vmatpush1.bf16.msra.mxu0 %v1414_v20  ;;  %v1432_v19 = vpack.c.bf16 %v457_v10, %v453_v9  ;;  %v454_v20 = vld [vmem:[#allocation5 + $0x690] sm:$0xff]  ;;  %v488_v9 = vld [vmem:[#allocation5 + $0x7a0] sm:$0xff]  ;;  %v237_v10 = vld [vmem:[%s2012_s23 + $0x1c8] sm:$0xff] }
  0xaf   : > { %1543 = vmatpush1.bf16.msra.mxu1 %v1542_v23  ;;  %600 = vmatprep.mubr.f32.mxu0 %v205_v26  ;;  %v461_v23 = vld [vmem:[#allocation5 + $0x6c8] sm:$0xff]  ;;  %v1562_v29 = vpack.c.bf16 %v458_v21, %v454_v20  ;;  %v499_v20 = vld [vmem:[#allocation5 + $0x7f8] sm:$0xff] }
  0xb0   : > { %922 = vmatprep.mubr.f32.mxu1 %v205_v26  ;;  %1417 = vmatprep.subr.bf16.mxu0 %v1416_v27  ;;  %v1434_v26 = vpack.c.bf16 %v456_v17, %v452_v16  ;;  %v463_v27 = vld [vmem:[#allocation5 + $0x6d8] sm:$0xff]  ;;  %v497_v16 = vld [vmem:[#allocation5 + $0x7e8] sm:$0xff]  ;;  %v236_v17 = vld [vmem:[%s2012_s23 + $0x1c0] sm:$0xff] }
  0xb1   : > { %601 = vmatmul.mubr.f32.gmra.mrb[12].mxu0 %v204_v33  ;;  %1545 = vmatprep.subr.bf16.mxu1 %v1544_v30  ;;  %v460_v30 = vld [vmem:[#allocation5 + $0x6c0] sm:$0xff]  ;;  %v1564_v36 = vpack.c.bf16 %v467_v28, %v463_v27  ;;  %v498_v27 = vld [vmem:[#allocation5 + $0x7f0] sm:$0xff] }
  0xb2   : > { %923 = vmatmul.mubr.f32.gmra.mrb[12].mxu1 %v204_v33  ;;  %1419 = vmatpush1.bf16.msra.mxu0 %v1418_v34  ;;  %v1436_v33 = vpack.c.bf16 %v465_v24, %v461_v23  ;;  %v462_v34 = vld [vmem:[#allocation5 + $0x6d0] sm:$0xff]  ;;  %v496_v23 = vld [vmem:[#allocation5 + $0x7e0] sm:$0xff]  ;;  %v241_v24 = vld [vmem:[%s2012_s23 + $0x1e8] sm:$0xff] }
  0xb3   : > { %1547 = vmatpush1.bf16.msra.mxu1 %v1546_v37  ;;  %606 = vmatprep.mubr.f32.mxu0 %v209_v40  ;;  %v469_v37 = vld [vmem:[#allocation5 + $0x708] sm:$0xff]  ;;  %v1566_v43 = vpack.c.bf16 %v466_v35, %v462_v34  ;;  %v187_v34 = vld [vmem:[%s2012_s23 + $0x38] sm:$0xff]  ;;  %v186_v35 = vld [vmem:[%s2012_s23 + $0x30] sm:$0xff] }
  0xb4   : > { %928 = vmatprep.mubr.f32.mxu1 %v209_v40  ;;  %1421 = vmatprep.subr.bf16.mxu0 %v1420_v41  ;;  %v1438_v40 = vpack.c.bf16 %v464_v31, %v460_v30  ;;  %v471_v41 = vld [vmem:[#allocation5 + $0x718] sm:$0xff] }
  0xb5   : > { %607 = vmatmul.mubr.f32.gmra.mrb[14].mxu0 %v208_v47  ;;  %1549 = vmatprep.subr.bf16.mxu1 %v1548_v44  ;;  %v468_v44 = vld [vmem:[#allocation5 + $0x700] sm:$0xff]  ;;  %v1568_v50 = vpack.c.bf16 %v475_v42, %v471_v41  ;;  %v198_v41 = vld [vmem:[%s2012_s23 + $0x90] sm:$0xff]  ;;  %v203_v42 = vld [vmem:[%s2012_s23 + $0xb8] sm:$0xff] }
  0xb6   : > { %929 = vmatmul.mubr.f32.gmra.mrb[14].mxu1 %v208_v47  ;;  %1423 = vmatpush1.bf16.msra.mxu0 %v1422_v48  ;;  %v1440_v47 = vpack.c.bf16 %v473_v38, %v469_v37  ;;  %v470_v48 = vld [vmem:[#allocation5 + $0x710] sm:$0xff]  ;;  %v195_v38 = vld [vmem:[%s2012_s23 + $0x78] sm:$0xff] }
  0xb7   : > { %1551 = vmatpush1.bf16.msra.mxu1 %v1550_v51  ;;  %612 = vmatprep.mubr.f32.mxu0 %v213_v54  ;;  %v477_v51 = vld [vmem:[#allocation5 + $0x748] sm:$0xff]  ;;  %v1570_v57 = vpack.c.bf16 %v474_v49, %v470_v48  ;;  %v190_v37 = vld [vmem:[%s2012_s23 + $0x50] sm:$0xff]  ;;  %v215_v48 = vld [vmem:[%s2012_s23 + $0x118] sm:$0xff] }
  0xb8   : > { %934 = vmatprep.mubr.f32.mxu1 %v213_v54  ;;  %1425 = vmatprep.subr.bf16.mxu0 %v1424_v55  ;;  %v1442_v54 = vpack.c.bf16 %v472_v45, %v468_v44  ;;  %v479_v55 = vld [vmem:[#allocation5 + $0x758] sm:$0xff]  ;;  %v206_v45 = vld [vmem:[%s2012_s23 + $0xd0] sm:$0xff] }
  0xb9   : > { %613 = vmatmul.mubr.f32.gmra.mrb[16].mxu0 %v212_v61  ;;  %1553 = vmatprep.subr.bf16.mxu1 %v1552_v58  ;;  %v476_v58 = vld [vmem:[#allocation5 + $0x740] sm:$0xff]  ;;  %v1572_v0 = vpack.c.bf16 %v483_v56, %v479_v55  ;;  %v207_v44 = vld [vmem:[%s2012_s23 + $0xd8] sm:$0xff]  ;;  %v214_v49 = vld [vmem:[%s2012_s23 + $0x110] sm:$0xff] }
  0xba   : > { %935 = vmatmul.mubr.f32.gmra.mrb[16].mxu1 %v212_v61  ;;  %1427 = vmatpush1.bf16.msra.mxu0 %v1426_v62  ;;  %v1444_v61 = vpack.c.bf16 %v481_v52, %v477_v51  ;;  %v478_v62 = vld [vmem:[#allocation5 + $0x750] sm:$0xff]  ;;  %v223_v52 = vld [vmem:[%s2012_s23 + $0x158] sm:$0xff] }
  0xbb   : > { %1555 = vmatpush1.bf16.msra.mxu1 %v1554_v1  ;;  %618 = vmatprep.mubr.f32.mxu0 %v217_v4  ;;  %v485_v1 = vld [vmem:[#allocation5 + $0x788] sm:$0xff]  ;;  %v1574_v7 = vpack.c.bf16 %v482_v63, %v478_v62  ;;  %v218_v51 = vld [vmem:[%s2012_s23 + $0x130] sm:$0xff]  ;;  %v231_v56 = vld [vmem:[%s2012_s23 + $0x198] sm:$0xff] }
  0xbc   : > { %940 = vmatprep.mubr.f32.mxu1 %v217_v4  ;;  %1429 = vmatprep.subr.bf16.mxu0 %v1428_v5  ;;  %v1446_v4 = vpack.c.bf16 %v480_v59, %v476_v58  ;;  %v487_v5 = vld [vmem:[#allocation5 + $0x798] sm:$0xff]  ;;  %v226_v55 = vld [vmem:[%s2012_s23 + $0x170] sm:$0xff] }
  0xbd   : > { %619 = vmatmul.mubr.f32.gmra.mrb[18].mxu0 %v216_v11  ;;  %1557 = vmatprep.subr.bf16.mxu1 %v1556_v8  ;;  %v484_v8 = vld [vmem:[#allocation5 + $0x780] sm:$0xff]  ;;  %v1576_v14 = vpack.c.bf16 %v491_v6, %v487_v5  ;;  %v235_v58 = vld [vmem:[%s2012_s23 + $0x1b8] sm:$0xff]  ;;  %v234_v59 = vld [vmem:[%s2012_s23 + $0x1b0] sm:$0xff] }
  0xbe   : > { %941 = vmatmul.mubr.f32.gmra.mrb[18].mxu1 %v216_v11  ;;  %1431 = vmatpush1.bf16.msra.mxu0 %v1430_v12  ;;  %v1448_v11 = vpack.c.bf16 %v489_v2, %v485_v1  ;;  %v486_v12 = vld [vmem:[#allocation5 + $0x790] sm:$0xff]  ;;  %v243_v62 = vld [vmem:[%s2012_s23 + $0x1f8] sm:$0xff] }
  0xbf   : > { %1559 = vmatpush1.bf16.msra.mxu1 %v1558_v15  ;;  %624 = vmatprep.mubr.f32.mxu0 %v221_v18  ;;  %v493_v15 = vld [vmem:[#allocation5 + $0x7c8] sm:$0xff]  ;;  %v1578_v21 = vpack.c.bf16 %v490_v13, %v486_v12  ;;  %v242_v63 = vld [vmem:[%s2012_s23 + $0x1f0] sm:$0xff] }
  0xc0   : > { %946 = vmatprep.mubr.f32.mxu1 %v221_v18  ;;  %1433 = vmatprep.subr.bf16.mxu0 %v1432_v19  ;;  %v1450_v18 = vpack.c.bf16 %v488_v9, %v484_v8  ;;  %v495_v19 = vld [vmem:[#allocation5 + $0x7d8] sm:$0xff] }
  0xc1   : > { %625 = vmatmul.mubr.f32.gmra.mrb[20].mxu0 %v220_v25  ;;  %1561 = vmatprep.subr.bf16.mxu1 %v1560_v22  ;;  %v492_v22 = vld [vmem:[#allocation5 + $0x7c0] sm:$0xff]  ;;  %v1580_v28 = vpack.c.bf16 %v499_v20, %v495_v19 }
  0xc2   : > { %947 = vmatmul.mubr.f32.gmra.mrb[20].mxu1 %v220_v25  ;;  %1435 = vmatpush1.bf16.msra.mxu0 %v1434_v26  ;;  %v1452_v25 = vpack.c.bf16 %v497_v16, %v493_v15  ;;  %v494_v26 = vld [vmem:[#allocation5 + $0x7d0] sm:$0xff]  ;;  %v1454_v30 = vpack.c.bf16 %v496_v23, %v492_v22 }
  0xc3   : > { %1563 = vmatpush1.bf16.msra.mxu1 %v1562_v29  ;;  %630 = vmatprep.mubr.f32.mxu0 %v225_v32  ;;  %v240_v29 = vld [vmem:[%s2012_s23 + $0x1e0] sm:$0xff]  ;;  %v1582_v31 = vpack.c.bf16 %v498_v27, %v494_v26 }
  0xc4   : > { %952 = vmatprep.mubr.f32.mxu1 %v225_v32  ;;  %1437 = vmatprep.subr.bf16.mxu0 %v1436_v33  ;;  %v183_v32 = vld [vmem:[%s2012_s23 + $0x18] sm:$0xff]  ;;  %v182_v33 = vld [vmem:[%s2012_s23 + $0x10] sm:$0xff] }
  0xc5   : > { %631 = vmatmul.mubr.f32.gmra.mrb[22].mxu0 %v224_v39  ;;  %1565 = vmatprep.subr.bf16.mxu1 %v1564_v36  ;;  %v191_v36 = vld [vmem:[%s2012_s23 + $0x58] sm:$0xff] }
  0xc6   : > { %953 = vmatmul.mubr.f32.gmra.mrb[22].mxu1 %v224_v39  ;;  %1439 = vmatpush1.bf16.msra.mxu0 %v1438_v40  ;;  %v194_v39 = vld [vmem:[%s2012_s23 + $0x70] sm:$0xff]  ;;  %v199_v40 = vld [vmem:[%s2012_s23 + $0x98] sm:$0xff] }
  0xc7   : > { %1567 = vmatpush1.bf16.msra.mxu1 %v1566_v43  ;;  %636 = vmatprep.mubr.f32.mxu0 %v229_v46  ;;  %v202_v43 = vld [vmem:[%s2012_s23 + $0xb0] sm:$0xff] }
  0xc8   : > { %958 = vmatprep.mubr.f32.mxu1 %v229_v46  ;;  %1441 = vmatprep.subr.bf16.mxu0 %v1440_v47  ;;  %v211_v46 = vld [vmem:[%s2012_s23 + $0xf8] sm:$0xff]  ;;  %v210_v47 = vld [vmem:[%s2012_s23 + $0xf0] sm:$0xff] }
  0xc9   : > { %637 = vmatmul.mubr.f32.gmra.mrb[24].mxu0 %v228_v53  ;;  %1569 = vmatprep.subr.bf16.mxu1 %v1568_v50  ;;  %v219_v50 = vld [vmem:[%s2012_s23 + $0x138] sm:$0xff] }
  0xca   : > { %959 = vmatmul.mubr.f32.gmra.mrb[24].mxu1 %v228_v53  ;;  %1443 = vmatpush1.bf16.msra.mxu0 %v1442_v54  ;;  %v222_v53 = vld [vmem:[%s2012_s23 + $0x150] sm:$0xff]  ;;  %v227_v54 = vld [vmem:[%s2012_s23 + $0x178] sm:$0xff] }
  0xcb   : > { %1571 = vmatpush1.bf16.msra.mxu1 %v1570_v57  ;;  %642 = vmatprep.mubr.f32.mxu0 %v233_v60  ;;  %v230_v57 = vld [vmem:[%s2012_s23 + $0x190] sm:$0xff] }
  0xcc   : > { %964 = vmatprep.mubr.f32.mxu1 %v233_v60  ;;  %1445 = vmatprep.subr.bf16.mxu0 %v1444_v61  ;;  %v239_v60 = vld [vmem:[%s2012_s23 + $0x1d8] sm:$0xff]  ;;  %v238_v61 = vld [vmem:[%s2012_s23 + $0x1d0] sm:$0xff] }
  0xcd   : > { %643 = vmatmul.mubr.f32.gmra.mrb[26].mxu0 %v232_v3  ;;  %1573 = vmatprep.subr.bf16.mxu1 %v1572_v0 }
  0xce   : > { %965 = vmatmul.mubr.f32.gmra.mrb[26].mxu1 %v232_v3  ;;  %1447 = vmatpush1.bf16.msra.mxu0 %v1446_v4 }
  0xcf   : > { %1575 = vmatpush1.bf16.msra.mxu1 %v1574_v7  ;;  %648 = vmatprep.mubr.f32.mxu0 %v237_v10 }
  0xd0   : > { %970 = vmatprep.mubr.f32.mxu1 %v237_v10  ;;  %1449 = vmatprep.subr.bf16.mxu0 %v1448_v11 }
  0xd1   : > { %649 = vmatmul.mubr.f32.gmra.mrb[28].mxu0 %v236_v17  ;;  %1577 = vmatprep.subr.bf16.mxu1 %v1576_v14 }
  0xd2   : > { %971 = vmatmul.mubr.f32.gmra.mrb[28].mxu1 %v236_v17  ;;  %1451 = vmatpush1.bf16.msra.mxu0 %v1450_v18 }
  0xd3   : > { %1579 = vmatpush1.bf16.msra.mxu1 %v1578_v21  ;;  %654 = vmatprep.mubr.f32.mxu0 %v241_v24 }
  0xd4   : > { %976 = vmatprep.mubr.f32.mxu1 %v241_v24  ;;  %1453 = vmatprep.subr.bf16.mxu0 %v1452_v25 }
  0xd5   : > { %655 = vmatmul.mubr.f32.gmra.mrb[30].mxu0 %v240_v29  ;;  %1581 = vmatprep.subr.bf16.mxu1 %v1580_v28 }
  0xd6   : > { %977 = vmatmul.mubr.f32.gmra.mrb[30].mxu1 %v240_v29  ;;  %1455 = vmatpush1.bf16.msra.mxu0 %v1454_v30 }
  0xd7   : > { %1583 = vmatpush1.bf16.msra.mxu1 %v1582_v31  ;;  %725 = vmatprep.mubr.f32.mxu0 %v183_v32 }
  0xd8   : > { %1047 = vmatprep.mubr.f32.mxu1 %v183_v32 }
  0xd9   : > { %726 = vmatmul.mubr.f32.vlgmr.msra.gmra.mrb[0].mxu0 %v182_v33 }
  0xda   : > { %1048 = vmatmul.mubr.f32.vlgmr.msra.gmra.mrb[0].mxu1 %v182_v33  ;;  %731 = vmatprep.mubr.f32.mxu0 %v187_v34 }
  0xdb   : > { %1053 = vmatprep.mubr.f32.mxu1 %v187_v34 }
  0xdd   : > { %732 = vmatmul.mubr.f32.gmra.mrb[2].mxu0 %v186_v35 }
  0xde   : > { %1054 = vmatmul.mubr.f32.gmra.mrb[2].mxu1 %v186_v35  ;;  %737 = vmatprep.mubr.f32.mxu0 %v191_v36 }
  0xdf   : > { %1059 = vmatprep.mubr.f32.mxu1 %v191_v36 }
  0xe1   : > { %738 = vmatmul.mubr.f32.gmra.mrb[4].mxu0 %v190_v37 }
  0xe2   : > { %1060 = vmatmul.mubr.f32.gmra.mrb[4].mxu1 %v190_v37  ;;  %743 = vmatprep.mubr.f32.mxu0 %v195_v38 }
  0xe3   : > { %1065 = vmatprep.mubr.f32.mxu1 %v195_v38 }
  0xe5   : > { %744 = vmatmul.mubr.f32.gmra.mrb[6].mxu0 %v194_v39 }
  0xe6   : > { %1066 = vmatmul.mubr.f32.gmra.mrb[6].mxu1 %v194_v39  ;;  %749 = vmatprep.mubr.f32.mxu0 %v199_v40 }
  0xe7   : > { %1071 = vmatprep.mubr.f32.mxu1 %v199_v40 }
  0xe9   : > { %750 = vmatmul.mubr.f32.gmra.mrb[8].mxu0 %v198_v41 }
  0xea   : > { %1072 = vmatmul.mubr.f32.gmra.mrb[8].mxu1 %v198_v41  ;;  %755 = vmatprep.mubr.f32.mxu0 %v203_v42 }
  0xeb   : > { %1077 = vmatprep.mubr.f32.mxu1 %v203_v42 }
  0xed   : > { %756 = vmatmul.mubr.f32.gmra.mrb[10].mxu0 %v202_v43 }
  0xee   : > { %1078 = vmatmul.mubr.f32.gmra.mrb[10].mxu1 %v202_v43  ;;  %761 = vmatprep.mubr.f32.mxu0 %v207_v44 }
  0xef   : > { %1083 = vmatprep.mubr.f32.mxu1 %v207_v44 }
  0xf1   : > { %762 = vmatmul.mubr.f32.gmra.mrb[12].mxu0 %v206_v45 }
  0xf2   : > { %1084 = vmatmul.mubr.f32.gmra.mrb[12].mxu1 %v206_v45  ;;  %767 = vmatprep.mubr.f32.mxu0 %v211_v46 }
  0xf3   : > { %1089 = vmatprep.mubr.f32.mxu1 %v211_v46 }
  0xf5   : > { %768 = vmatmul.mubr.f32.gmra.mrb[14].mxu0 %v210_v47 }
  0xf6   : > { %1090 = vmatmul.mubr.f32.gmra.mrb[14].mxu1 %v210_v47  ;;  %773 = vmatprep.mubr.f32.mxu0 %v215_v48 }
  0xf7   : > { %1095 = vmatprep.mubr.f32.mxu1 %v215_v48 }
  0xf9   : > { %774 = vmatmul.mubr.f32.gmra.mrb[16].mxu0 %v214_v49 }
  0xfa   : > { %1096 = vmatmul.mubr.f32.gmra.mrb[16].mxu1 %v214_v49  ;;  %779 = vmatprep.mubr.f32.mxu0 %v219_v50 }
  0xfb   : > { %1101 = vmatprep.mubr.f32.mxu1 %v219_v50 }
  0xfd   : > { %780 = vmatmul.mubr.f32.gmra.mrb[18].mxu0 %v218_v51 }
  0xfe   : > { %1102 = vmatmul.mubr.f32.gmra.mrb[18].mxu1 %v218_v51  ;;  %785 = vmatprep.mubr.f32.mxu0 %v223_v52 }
  0xff   : > { %1107 = vmatprep.mubr.f32.mxu1 %v223_v52 }
 0x101   : > { %786 = vmatmul.mubr.f32.gmra.mrb[20].mxu0 %v222_v53 }
 0x102   : > { %1108 = vmatmul.mubr.f32.gmra.mrb[20].mxu1 %v222_v53  ;;  %791 = vmatprep.mubr.f32.mxu0 %v227_v54 }
 0x103   : > { %1113 = vmatprep.mubr.f32.mxu1 %v227_v54 }
 0x105   : > { %792 = vmatmul.mubr.f32.gmra.mrb[22].mxu0 %v226_v55 }
 0x106   : > { %1114 = vmatmul.mubr.f32.gmra.mrb[22].mxu1 %v226_v55  ;;  %797 = vmatprep.mubr.f32.mxu0 %v231_v56 }
 0x107   : > { %1119 = vmatprep.mubr.f32.mxu1 %v231_v56 }
 0x109   : > { %798 = vmatmul.mubr.f32.gmra.mrb[24].mxu0 %v230_v57 }
 0x10a   : > { %1120 = vmatmul.mubr.f32.gmra.mrb[24].mxu1 %v230_v57  ;;  %803 = vmatprep.mubr.f32.mxu0 %v235_v58 }
 0x10b   : > { %1125 = vmatprep.mubr.f32.mxu1 %v235_v58 }
 0x10d   : > { %804 = vmatmul.mubr.f32.gmra.mrb[26].mxu0 %v234_v59 }
 0x10e   : > { %1126 = vmatmul.mubr.f32.gmra.mrb[26].mxu1 %v234_v59  ;;  %809 = vmatprep.mubr.f32.mxu0 %v239_v60 }
 0x10f   : > { %1131 = vmatprep.mubr.f32.mxu1 %v239_v60 }
 0x111   : > { %810 = vmatmul.mubr.f32.gmra.mrb[28].mxu0 %v238_v61 }
 0x112   : > { %1132 = vmatmul.mubr.f32.gmra.mrb[28].mxu1 %v238_v61  ;;  %815 = vmatprep.mubr.f32.mxu0 %v243_v62 }
 0x113   : > { %1137 = vmatprep.mubr.f32.mxu1 %v243_v62 }
 0x115   : > { %816 = vmatmul.mubr.f32.gmra.mrb[30].mxu0 %v242_v63 }
 0x116   : > { %1138 = vmatmul.mubr.f32.gmra.mrb[30].mxu1 %v242_v63 }
 0x1ac   : > { %v727_v0 = vpop.f32.mrb[0].mxu0 }
 0x1ad   : > { %1144 = vst [vmem:[%s2088_s15] sm:$0xff] %v727_v0  ;;  %v1049_v1 = vpop.f32.mrb[0].mxu1  ;;  %v729_v2 = vpop.f32.mrb[1].mxu0 }
 0x1ae   : > { %1146 = vst [vmem:[%s2088_s15 + $0x10] sm:$0xff] %v1049_v1  ;;  %1145 = vst [vmem:[%s2088_s15 + $0x8] sm:$0xff] %v729_v2  ;;  %v1051_v3 = vpop.f32.mrb[1].mxu1 }
 0x1af   : > { %1147 = vst [vmem:[%s2088_s15 + $0x18] sm:$0xff] %v1051_v3 }
 0x1b0   : > { %v733_v4 = vpop.f32.mrb[2].mxu0 }
 0x1b1   : > { %1148 = vst [vmem:[%s2088_s15 + $0x20] sm:$0xff] %v733_v4  ;;  %v1055_v5 = vpop.f32.mrb[2].mxu1  ;;  %v735_v6 = vpop.f32.mrb[3].mxu0 }
 0x1b2   : > { %1150 = vst [vmem:[%s2088_s15 + $0x30] sm:$0xff] %v1055_v5  ;;  %1149 = vst [vmem:[%s2088_s15 + $0x28] sm:$0xff] %v735_v6  ;;  %v1057_v7 = vpop.f32.mrb[3].mxu1 }
 0x1b3   : > { %1151 = vst [vmem:[%s2088_s15 + $0x38] sm:$0xff] %v1057_v7 }
 0x1b4   : > { %v739_v8 = vpop.f32.mrb[4].mxu0 }
 0x1b5   : > { %1152 = vst [vmem:[%s2088_s15 + $0x40] sm:$0xff] %v739_v8  ;;  %v1061_v9 = vpop.f32.mrb[4].mxu1  ;;  %v741_v10 = vpop.f32.mrb[5].mxu0 }
 0x1b6   : > { %1154 = vst [vmem:[%s2088_s15 + $0x50] sm:$0xff] %v1061_v9  ;;  %1153 = vst [vmem:[%s2088_s15 + $0x48] sm:$0xff] %v741_v10  ;;  %v1063_v11 = vpop.f32.mrb[5].mxu1 }
 0x1b7   : > { %1155 = vst [vmem:[%s2088_s15 + $0x58] sm:$0xff] %v1063_v11 }
 0x1b8   : > { %v745_v12 = vpop.f32.mrb[6].mxu0 }
 0x1b9   : > { %1156 = vst [vmem:[%s2088_s15 + $0x60] sm:$0xff] %v745_v12  ;;  %v1067_v13 = vpop.f32.mrb[6].mxu1  ;;  %v747_v14 = vpop.f32.mrb[7].mxu0 }
 0x1ba   : > { %1158 = vst [vmem:[%s2088_s15 + $0x70] sm:$0xff] %v1067_v13  ;;  %1157 = vst [vmem:[%s2088_s15 + $0x68] sm:$0xff] %v747_v14  ;;  %v1069_v15 = vpop.f32.mrb[7].mxu1 }
 0x1bb   : > { %1159 = vst [vmem:[%s2088_s15 + $0x78] sm:$0xff] %v1069_v15 }
 0x1bc   : > { %v751_v16 = vpop.f32.mrb[8].mxu0 }
 0x1bd   : > { %1160 = vst [vmem:[%s2088_s15 + $0x80] sm:$0xff] %v751_v16  ;;  %v1073_v17 = vpop.f32.mrb[8].mxu1  ;;  %v753_v18 = vpop.f32.mrb[9].mxu0 }
 0x1be   : > { %1162 = vst [vmem:[%s2088_s15 + $0x90] sm:$0xff] %v1073_v17  ;;  %1161 = vst [vmem:[%s2088_s15 + $0x88] sm:$0xff] %v753_v18  ;;  %v1075_v19 = vpop.f32.mrb[9].mxu1 }
 0x1bf   : > { %1163 = vst [vmem:[%s2088_s15 + $0x98] sm:$0xff] %v1075_v19 }
 0x1c0   : > { %v757_v20 = vpop.f32.mrb[10].mxu0 }
 0x1c1   : > { %1164 = vst [vmem:[%s2088_s15 + $0xa0] sm:$0xff] %v757_v20  ;;  %v1079_v21 = vpop.f32.mrb[10].mxu1  ;;  %v759_v22 = vpop.f32.mrb[11].mxu0 }
 0x1c2   : > { %1166 = vst [vmem:[%s2088_s15 + $0xb0] sm:$0xff] %v1079_v21  ;;  %1165 = vst [vmem:[%s2088_s15 + $0xa8] sm:$0xff] %v759_v22  ;;  %v1081_v23 = vpop.f32.mrb[11].mxu1 }
 0x1c3   : > { %1167 = vst [vmem:[%s2088_s15 + $0xb8] sm:$0xff] %v1081_v23 }
 0x1c4   : > { %v763_v24 = vpop.f32.mrb[12].mxu0 }
 0x1c5   : > { %1168 = vst [vmem:[%s2088_s15 + $0xc0] sm:$0xff] %v763_v24  ;;  %v1085_v25 = vpop.f32.mrb[12].mxu1  ;;  %v765_v26 = vpop.f32.mrb[13].mxu0 }
 0x1c6   : > { %1170 = vst [vmem:[%s2088_s15 + $0xd0] sm:$0xff] %v1085_v25  ;;  %1169 = vst [vmem:[%s2088_s15 + $0xc8] sm:$0xff] %v765_v26  ;;  %v1087_v27 = vpop.f32.mrb[13].mxu1 }
 0x1c7   : > { %1171 = vst [vmem:[%s2088_s15 + $0xd8] sm:$0xff] %v1087_v27 }
 0x1c8   : > { %v769_v28 = vpop.f32.mrb[14].mxu0 }
 0x1c9   : > { %1172 = vst [vmem:[%s2088_s15 + $0xe0] sm:$0xff] %v769_v28  ;;  %v1091_v29 = vpop.f32.mrb[14].mxu1  ;;  %v771_v30 = vpop.f32.mrb[15].mxu0 }
 0x1ca   : > { %1174 = vst [vmem:[%s2088_s15 + $0xf0] sm:$0xff] %v1091_v29  ;;  %1173 = vst [vmem:[%s2088_s15 + $0xe8] sm:$0xff] %v771_v30  ;;  %v1093_v31 = vpop.f32.mrb[15].mxu1 }
 0x1cb   : > { %1175 = vst [vmem:[%s2088_s15 + $0xf8] sm:$0xff] %v1093_v31 }
 0x1cc   : > { %v775_v32 = vpop.f32.mrb[16].mxu0 }
 0x1cd   : > { %1176 = vst [vmem:[%s2088_s15 + $0x100] sm:$0xff] %v775_v32  ;;  %v1097_v33 = vpop.f32.mrb[16].mxu1  ;;  %v777_v34 = vpop.f32.mrb[17].mxu0 }
 0x1ce   : > { %1178 = vst [vmem:[%s2088_s15 + $0x110] sm:$0xff] %v1097_v33  ;;  %1177 = vst [vmem:[%s2088_s15 + $0x108] sm:$0xff] %v777_v34  ;;  %v1099_v35 = vpop.f32.mrb[17].mxu1 }
 0x1cf   : > { %1179 = vst [vmem:[%s2088_s15 + $0x118] sm:$0xff] %v1099_v35 }
 0x1d0   : > { %v781_v36 = vpop.f32.mrb[18].mxu0 }
 0x1d1   : > { %1180 = vst [vmem:[%s2088_s15 + $0x120] sm:$0xff] %v781_v36  ;;  %v1103_v37 = vpop.f32.mrb[18].mxu1  ;;  %v783_v38 = vpop.f32.mrb[19].mxu0 }
 0x1d2   : > { %1182 = vst [vmem:[%s2088_s15 + $0x130] sm:$0xff] %v1103_v37  ;;  %1181 = vst [vmem:[%s2088_s15 + $0x128] sm:$0xff] %v783_v38  ;;  %v1105_v39 = vpop.f32.mrb[19].mxu1 }
 0x1d3   : > { %1183 = vst [vmem:[%s2088_s15 + $0x138] sm:$0xff] %v1105_v39 }
 0x1d4   : > { %v787_v40 = vpop.f32.mrb[20].mxu0 }
 0x1d5   : > { %1184 = vst [vmem:[%s2088_s15 + $0x140] sm:$0xff] %v787_v40  ;;  %v1109_v41 = vpop.f32.mrb[20].mxu1  ;;  %v789_v42 = vpop.f32.mrb[21].mxu0 }
 0x1d6   : > { %1186 = vst [vmem:[%s2088_s15 + $0x150] sm:$0xff] %v1109_v41  ;;  %1185 = vst [vmem:[%s2088_s15 + $0x148] sm:$0xff] %v789_v42  ;;  %v1111_v43 = vpop.f32.mrb[21].mxu1 }
 0x1d7   : > { %1187 = vst [vmem:[%s2088_s15 + $0x158] sm:$0xff] %v1111_v43 }
 0x1d8   : > { %v793_v44 = vpop.f32.mrb[22].mxu0 }
 0x1d9   : > { %1188 = vst [vmem:[%s2088_s15 + $0x160] sm:$0xff] %v793_v44  ;;  %v1115_v45 = vpop.f32.mrb[22].mxu1  ;;  %v795_v46 = vpop.f32.mrb[23].mxu0 }
 0x1da   : > { %1190 = vst [vmem:[%s2088_s15 + $0x170] sm:$0xff] %v1115_v45  ;;  %1189 = vst [vmem:[%s2088_s15 + $0x168] sm:$0xff] %v795_v46  ;;  %v1117_v47 = vpop.f32.mrb[23].mxu1 }
 0x1db   : > { %1191 = vst [vmem:[%s2088_s15 + $0x178] sm:$0xff] %v1117_v47 }
 0x1dc   : > { %v799_v48 = vpop.f32.mrb[24].mxu0 }
 0x1dd   : > { %1192 = vst [vmem:[%s2088_s15 + $0x180] sm:$0xff] %v799_v48  ;;  %v1121_v49 = vpop.f32.mrb[24].mxu1  ;;  %v801_v50 = vpop.f32.mrb[25].mxu0 }
 0x1de   : > { %1194 = vst [vmem:[%s2088_s15 + $0x190] sm:$0xff] %v1121_v49  ;;  %1193 = vst [vmem:[%s2088_s15 + $0x188] sm:$0xff] %v801_v50  ;;  %v1123_v51 = vpop.f32.mrb[25].mxu1 }
 0x1df   : > { %1195 = vst [vmem:[%s2088_s15 + $0x198] sm:$0xff] %v1123_v51 }
 0x1e0   : > { %v805_v52 = vpop.f32.mrb[26].mxu0 }
 0x1e1   : > { %1196 = vst [vmem:[%s2088_s15 + $0x1a0] sm:$0xff] %v805_v52  ;;  %v1127_v53 = vpop.f32.mrb[26].mxu1  ;;  %v807_v54 = vpop.f32.mrb[27].mxu0 }
 0x1e2   : > { %1198 = vst [vmem:[%s2088_s15 + $0x1b0] sm:$0xff] %v1127_v53  ;;  %1197 = vst [vmem:[%s2088_s15 + $0x1a8] sm:$0xff] %v807_v54  ;;  %v1129_v55 = vpop.f32.mrb[27].mxu1 }
 0x1e3   : > { %1199 = vst [vmem:[%s2088_s15 + $0x1b8] sm:$0xff] %v1129_v55 }
 0x1e4   : > { %v811_v56 = vpop.f32.mrb[28].mxu0 }
 0x1e5   : > { %1200 = vst [vmem:[%s2088_s15 + $0x1c0] sm:$0xff] %v811_v56  ;;  %v1133_v57 = vpop.f32.mrb[28].mxu1  ;;  %v813_v58 = vpop.f32.mrb[29].mxu0 }
 0x1e6   : > { %1202 = vst [vmem:[%s2088_s15 + $0x1d0] sm:$0xff] %v1133_v57  ;;  %1201 = vst [vmem:[%s2088_s15 + $0x1c8] sm:$0xff] %v813_v58  ;;  %v1135_v59 = vpop.f32.mrb[29].mxu1 }
 0x1e7   : > { %1203 = vst [vmem:[%s2088_s15 + $0x1d8] sm:$0xff] %v1135_v59 }
 0x1e8   : > { %v817_v60 = vpop.f32.mrb[30].mxu0 }
 0x1e9   : > { %1204 = vst [vmem:[%s2088_s15 + $0x1e0] sm:$0xff] %v817_v60  ;;  %v1139_v61 = vpop.f32.mrb[30].mxu1  ;;  %v819_v62 = vpop.f32.mrb[31].mxu0 }
 0x1ea   : > { %1206 = vst [vmem:[%s2088_s15 + $0x1f0] sm:$0xff] %v1139_v61  ;;  %1205 = vst [vmem:[%s2088_s15 + $0x1e8] sm:$0xff] %v819_v62  ;;  %v1141_v63 = vpop.f32.mrb[31].mxu1 }
 0x1eb   : > { %1207 = vst [vmem:[%s2088_s15 + $0x1f8] sm:$0xff] %v1141_v63 }
 0x1ec   : > { %1780 = shalt.err (!%p1777_p7)
}
 0x1ed   : > { %s1781_s20 = scalar_lea.hbm %s2155_s22, 8192  ;;  %s1785_s25 = scalar_lea.hbm %s2207_s2, 16384 }
 0x1ee   : > { %p1782_p9 = scmp.ne.s32.totalorder %s2155_s22, %s1781_s20  ;;  %p1786_p5 = scmp.lt.u32.totalorder %s2155_s22, %s2207_s2 }
 0x1ef   : > { %p1787_p11 = scmp.lt.u32.totalorder %s1785_s25, %s1781_s20  ;;  %p1789_p4 = scmp.lt.u32.totalorder %s1781_s20, %s2155_s22 }
 0x1f0   : > { %p1783_p1 = pnand %p1782_p9, %p1955_p12 }
 0x1f1   : > { %p1788_p2 = por %p1787_p11, %p1786_p5 }
 0x1f2   : > { %p1784_p0 = pneg %p1783_p1 }
 0x1f3   : > { %p1790_p6 = por %p1789_p4, %p1788_p2 }
 0x1f5   : > { %p1791_p8 = pnand %p1790_p6, %p1784_p0 }
 0x1f7   : > { %1794 = shalt.err (!%p1791_p8)
}
 0x1f8   : > { %s1844_s30 = smov 512   ;;  %s1845_s23 = smov 32  }
 0x1f9   : > { %1654 = dma.vmem_to_hbm [thread:$0]  (%p1955_p12), %s2157_s4, 8192, %s2155_s22, %s1209_s13, %s1844_s30, %s1844_s30, %s1845_s23  }
 0x1fa PF: > { %s1238_s15 = sand.u32 1, %s1825_s9   ;;  %p2222_p10 = scmp.ne.s32.totalorder %s2212_s16, 0 }
 0x1fb   : > { %p2223_p13 = scmp.ge.s32.totalorder %s1837_s12, 2  ;;  %s1239_s17 = scalar_lea.sflag [#allocation4], %s1238_s15 }
 0x1fd   : > { %p1665_p3 = pnand %p2223_p13, %p2222_p10 }
 0x1ff   : > { %1820 = dma.done.wait (!%p1665_p3), %s1239_s17, 8192  }
 0x200   : > { %1822 = vsyncadd (!%p1665_p3), %s1239_s17, 4294959104  ;;  %p16_p7 = scmp.ge.s32.totalorder %s1917_s21, 4   ;;  %s2224_s9 = smov %s1829_s10 }
 0x201   : > { %s2225_s10 = smov %s1833_s11  ;;  %s2226_s11 = smov %s1951_s8 }
 0x202   : > { %s2227_s12 = smov %s1917_s21  ;;  %18 = sbr.rel (!%p16_p7) target bundleno = 6 (0x6), region = 77 }
 0x209   :  { %1244 = vsyncpa [#allocation3], 1 }
 0x20a   :  { %1246 = vsyncpa [#allocation3 + $0x1], 1 }
 0x20b   :  { %1247 = vsyncpa [#allocation6], 1 }
 0x20c   :  { %1248 = vsyncpa [#allocation4], 1 }
 0x20d   :  { %1250 = vsyncpa [#allocation4 + $0x1], 1 }

</bundles_post_ra>
